<compile_context>
chip_gen: v5e
topology: v5e:2x2
jax: 0.10.0
libtpu: 0.0.40
codegen_flags: <defaults>
</compile_context>

<pallas_src>
import functools

import jax
import jax.numpy as jnp
from jax.experimental import pallas as pl
from jax.experimental.pallas import tpu as pltpu


_VMEM_LIMIT_BYTES = 48 * 1024 * 1024  # < 64 MiB physical on v7x, > 16/32 MiB defaults


def _round_up(x, m):
    return (x + m - 1) // m * m


def _vmem_estimate(bb, l_pad, i_pad, n_tot, n_ks, co_pad, o_pad, act_bytes):
    """Rough VMEM footprint (bytes) of one grid step, incl. 2x pipeline buffers."""
    act = 2 * bb * l_pad * i_pad * act_bytes              # double-buffered input slab
    y = bb * l_pad * n_tot * 4                            # live f32 fused-matmul out
    tmp = 3 * bb * l_pad * co_pad * 4                     # per-K acc / roll / mask temps
    w = 2 * (i_pad * n_tot * act_bytes                    # constant-index weight blocks
             + n_ks * co_pad * 4
             + n_ks * co_pad * o_pad * 4
             + o_pad * 4)
    out = 2 * bb * o_pad * 4
    return act + y + tmp + w + out


def _text_cnn_kernel(emb_ref, w_all_ref, cb_ref, fcw_ref, fcb_ref, out_ref,
                     *, kernel_sizes, co_pad, seq_len):
    """One grid step: a (bb, L_pad, I_pad) slab of embeddings -> (bb, O_pad) logits.

    emb_ref : (bb, L_pad, I_pad)        token embeddings (compute_dtype)
    w_all_ref: (I_pad, n_taps*Co_pad)   all conv taps, columns (K-major, k, Co_pad)
    cb_ref  : (n_ks, Co_pad)            conv biases (f32, zero-padded)
    fcw_ref : (n_ks*Co_pad, O_pad)      fc weight, pre-transposed, zero-padded (f32)
    fcb_ref : (1, O_pad)                fc bias (f32, zero-padded)
    out_ref : (bb, O_pad)               logits (f32)
    """
    bt, l_pad, i_pad = emb_ref.shape

    # Batch flattened into the matmul M dim; layout-preserving because
    # L_pad % 8 == 0 and I_pad % 128 == 0.
    emb2 = emb_ref[...].reshape(bt * l_pad, i_pad)

    # Single fused MXU pass producing every (kernel-width, tap) channel at once.
    y = jnp.dot(emb2, w_all_ref[...],
                preferred_element_type=jnp.float32)        # (bt*L_pad, Ntot) f32
    n_tot = y.shape[1]
    y3 = y.reshape(bt, l_pad, n_tot)                       # (bt, L_pad, Ntot)

    cb = cb_ref[...]                                       # (n_ks, Co_pad)

    # Time index for the valid-window mask (hoisted; same shape as every acc).
    t_idx = jax.lax.broadcasted_iota(jnp.int32, (bt, l_pad, co_pad), 1)

    feats = []
    col = 0
    for idx, K in enumerate(kernel_sizes):
        lo = seq_len - K + 1                               # valid output positions
        # Tap k = 0 (lane-aligned column slice: col is a multiple of 128).
        acc = jax.lax.slice(y3, (0, 0, col), (bt, l_pad, col + co_pad))
        col += co_pad
        # Taps k = 1..K-1: XLU sublane roll instead of sublane-offset slices.
        for k in range(1, K):
            tap = jax.lax.slice(y3, (0, 0, col), (bt, l_pad, col + co_pad))
            acc = acc + pltpu.roll(tap, shift=l_pad - k, axis=1)
            col += co_pad

        # Mask wrapped / L-padded rows, then max-pool over time.  Bias + ReLU are
        # monotone, so they commute with the max and run on the pooled tile.
        acc = jnp.where(t_idx < lo, acc, -jnp.inf)
        pooled = jnp.max(acc, axis=1)                      # (bt, Co_pad)
        bias_k = cb[idx:idx + 1, :]                        # (1, Co_pad)
        feats.append(jnp.maximum(pooled + bias_k, 0.0))

    # Concat (lane-aligned 128-wide blocks) + ONE fc matmul; f32 tail throughout.
    feat = jnp.concatenate(feats, axis=1)                  # (bt, n_ks*Co_pad)
    logits = jnp.dot(feat, fcw_ref[...],
                     preferred_element_type=jnp.float32)   # (bt, O_pad)

    # Dropout is identity at inference time.
    out_ref[...] = logits + fcb_ref[...]


def text_cnn_forward(tokens, params, kernel_sizes, *, block_b=64,
                     compute_dtype=jnp.bfloat16):
    """Forward pass of Text_CNN.  tokens: (B, L) int32 -> logits (B, O) f32."""
    kernel_sizes = tuple(kernel_sizes)
    n_ks = len(kernel_sizes)
    V, I = params["embed"].shape
    Co = params[f"conv_b_{kernel_sizes[0]}"].shape[0]
    O = params["fc_w"].shape[0]
    B, L = tokens.shape
    assert L >= max(kernel_sizes), "sequence shorter than the largest kernel"

    i_pad = _round_up(I, 128)
    co_pad = _round_up(Co, 128)
    o_pad = _round_up(O, 128)
    l_pad = _round_up(L, 8)
    n_taps = sum(kernel_sizes)
    n_tot = n_taps * co_pad
    act_bytes = jnp.dtype(compute_dtype).itemsize

    # Embedding gather stays in XLA (see TODO at top) but reads/writes compute_dtype:
    # the table is cast BEFORE the take so the gather streams bf16, not f32.
    table = params["embed"].astype(compute_dtype)                        # (V, I)
    emb = jnp.take(table, tokens, axis=0)                                # (B, L, I)

    # Batch block: multiple of 8 (sublane-dense output store), shrunk to fit the
    # VMEM budget (v7x: 64 MiB/TC is the binding generation).
    bb = min(_round_up(max(block_b, 8), 8), _round_up(B, 8))
    while bb > 8 and _vmem_estimate(bb, l_pad, i_pad, n_tot, n_ks, co_pad,
                                    o_pad, act_bytes) > 0.7 * _VMEM_LIMIT_BYTES:
        bb = max(8, _round_up(bb // 2, 8))
    n_blocks = pl.cdiv(B, bb)
    b_pad = n_blocks * bb

    # Pad activations: batch -> multiple of bb, time -> multiple of 8 (masked in
    # kernel), embed dim -> multiple of 128 (zero rows in w_all, so it is exact).
    emb = jnp.pad(emb, ((0, b_pad - B), (0, l_pad - L), (0, i_pad - I)))

    # Pack all conv taps into one (I_pad, n_taps*Co_pad) weight; every tap's column
    # block starts at a multiple of 128 so in-kernel slices are lane-aligned.
    w_all = jnp.zeros((i_pad, n_tot), jnp.float32)
    col = 0
    for K in kernel_sizes:
        w = params[f"conv_w_{K}"]                          # (K, Co, I)  torch (Co,1,K,I)
        for k in range(K):
            w_all = w_all.at[:I, col:col + Co].set(jnp.transpose(w[k]))  # (I, Co)
            col += co_pad
    w_all = w_all.astype(compute_dtype)

    cb = jnp.zeros((n_ks, co_pad), jnp.float32)
    for j, K in enumerate(kernel_sizes):
        cb = cb.at[j, :Co].set(params[f"conv_b_{K}"])

    # fc weight pre-transposed to (n_ks*Co_pad, O_pad); padded rows/cols are zero so
    # padded pooled channels and padded logit lanes contribute nothing.
    fcw_pad = jnp.zeros((n_ks * co_pad, o_pad), jnp.float32)
    for j in range(n_ks):
        blk = params["fc_w"][:, j * Co:(j + 1) * Co].T                    # (Co, O)
        fcw_pad = fcw_pad.at[j * co_pad:j * co_pad + Co, :O].set(blk)
    fcb = jnp.zeros((1, o_pad), jnp.float32).at[0, :O].set(params["fc_b"])

    kernel = functools.partial(_text_cnn_kernel, kernel_sizes=kernel_sizes,
                               co_pad=co_pad, seq_len=L)

    out = pl.pallas_call(
        kernel,
        out_shape=jax.ShapeDtypeStruct((b_pad, o_pad), jnp.float32),
        grid=(n_blocks,),
        in_specs=[
            pl.BlockSpec((bb, l_pad, i_pad), lambda b: (b, 0, 0)),  # activation slab
            # Constant index maps -> loaded once, no per-step re-DMA.  They are still
            # double-buffered by the pipeliner; _vmem_estimate counts them at 2x.
            pl.BlockSpec((i_pad, n_tot), lambda b: (0, 0)),
            pl.BlockSpec((n_ks, co_pad), lambda b: (0, 0)),
            pl.BlockSpec((n_ks * co_pad, o_pad), lambda b: (0, 0)),
            pl.BlockSpec((1, o_pad), lambda b: (0, 0)),
        ],
        out_specs=pl.BlockSpec((bb, o_pad), lambda b: (b, 0)),      # lane-dense store
        compiler_params=pltpu.CompilerParams(
            dimension_semantics=("parallel",),                      # megacore sharding
            vmem_limit_bytes=_VMEM_LIMIT_BYTES),
    )(emb, w_all, cb, fcw_pad, fcb)

    return out[:B, :O]                                              # (B, O) f32


def reference_forward(tokens, params, kernel_sizes):
    emb = jnp.take(params["embed"], tokens, axis=0)                 # (B, L, I) f32
    L = emb.shape[1]
    feats = []
    for K in kernel_sizes:
        w = params[f"conv_w_{K}"]                                   # (K, Co, I)
        b = params[f"conv_b_{K}"]                                   # (Co,)
        lo = L - K + 1
        windows = jnp.stack([emb[:, t:t + K, :] for t in range(lo)], axis=1)
        conv = jnp.einsum("blki,kci->blc", windows, w) + b          # (B, Lo, Co)
        conv = jnp.maximum(conv, 0.0)
        feats.append(jnp.max(conv, axis=1))                         # (B, Co)
    feat = jnp.concatenate(feats, axis=1)                           # dropout == identity
    return feat @ params["fc_w"].T + params["fc_b"]


if __name__ == "__main__":
    # Small synthetic config: vocabulary_size=50, embed_dim=32, kernel_num=8,
    # kernel_sizes=(3,4,5), output_dim=4, dropout (inference -> identity).
    V, I, Co, O = 50, 32, 8, 4
    Ks = (3, 4, 5)
    B, L = 32, 16
    BLOCK_B = 8   # 4 grid steps -> exercises the blocked-batch pipeline / megacore axis

    key = jax.random.PRNGKey(0)
    k_embed, k_tok, k_fcw, k_fcb, *k_convs = jax.random.split(key, 4 + 2 * len(Ks))

    params = {
        "embed": 0.1 * jax.random.normal(k_embed, (V, I), jnp.float32),
        "fc_w": 0.1 * jax.random.normal(k_fcw, (O, len(Ks) * Co), jnp.float32),
        "fc_b": 0.1 * jax.random.normal(k_fcb, (O,), jnp.float32),
    }
    for i, K in enumerate(Ks):
        params[f"conv_w_{K}"] = 0.1 * jax.random.normal(
            k_convs[2 * i], (K, Co, I), jnp.float32)   # torch (Co,1,K,I) stored (K,Co,I)
        params[f"conv_b_{K}"] = 0.1 * jax.random.normal(
            k_convs[2 * i + 1], (Co,), jnp.float32)

    tokens = jax.random.randint(k_tok, (B, L), 0, V, dtype=jnp.int32)

    ref = jax.block_until_ready(reference_forward(tokens, params, Ks))

    # f32 operand path: tight check.
    logits_f32 = jax.block_until_ready(
        text_cnn_forward(tokens, params, Ks, block_b=BLOCK_B,
                         compute_dtype=jnp.float32))
    assert logits_f32.shape == (B, O), logits_f32.shape
    assert jnp.allclose(logits_f32, ref, atol=1e-4, rtol=1e-4), (logits_f32, ref)

    # Default bf16 matmul-operand path (f32 accumulation / f32 tail): looser check.
    logits_bf16 = jax.block_until_ready(
        text_cnn_forward(tokens, params, Ks, block_b=BLOCK_B))
    assert logits_bf16.shape == (B, O), logits_bf16.shape
    assert jnp.allclose(logits_bf16, ref, atol=2e-2, rtol=2e-2), (logits_bf16, ref)

    print("KERNEL_OK")
</pallas_src>

<mosaic_0001>
module attributes {stable_mosaic.version = 11 : i64} {
  func.func @_text_cnn_kernel(%arg0: i32, %arg1: memref<8x16x128xf32, #tpu.memory_space<vmem>>, %arg2: memref<128x1536xf32, #tpu.memory_space<vmem>>, %arg3: memref<3x128xf32, #tpu.memory_space<vmem>>, %arg4: memref<384x128xf32, #tpu.memory_space<vmem>>, %arg5: memref<1x128xf32, #tpu.memory_space<vmem>>, %arg6: memref<8x128xf32, #tpu.memory_space<vmem>>) attributes {dimension_semantics = [#tpu.dimension_semantics<parallel>], iteration_bounds = array<i64: 4>, scalar_prefetch = 0 : i64, scratch_operands = 0 : i64, tpu.core_type = #tpu.core_type<tc>, window_params = [{transform_indices = @transform_0, window_bounds = array<i64: 8, 16, 128>}, {pipeline_mode = #tpu.pipeline_mode<synchronous>, transform_indices = @transform_1, window_bounds = array<i64: 128, 1536>}, {pipeline_mode = #tpu.pipeline_mode<synchronous>, transform_indices = @transform_2, window_bounds = array<i64: 3, 128>}, {pipeline_mode = #tpu.pipeline_mode<synchronous>, transform_indices = @transform_3, window_bounds = array<i64: 384, 128>}, {pipeline_mode = #tpu.pipeline_mode<synchronous>, transform_indices = @transform_4, window_bounds = array<i64: 1, 128>}, {transform_indices = @transform_5, window_bounds = array<i64: 8, 128>}]} {
    %c0 = arith.constant 0 : index
    %c0_0 = arith.constant 0 : index
    %c0_1 = arith.constant 0 : index
    %0 = vector.load %arg1[%c0, %c0_0, %c0_1] : memref<8x16x128xf32, #tpu.memory_space<vmem>>, vector<8x16x128xf32>
    %1 = vector.shape_cast %0 : vector<8x16x128xf32> to vector<128x128xf32>
    %c0_2 = arith.constant 0 : index
    %c0_3 = arith.constant 0 : index
    %2 = vector.load %arg2[%c0_2, %c0_3] : memref<128x1536xf32, #tpu.memory_space<vmem>>, vector<128x1536xf32>
    %cst = arith.constant dense<0.000000e+00> : vector<128x1536xf32>
    %3 = tpu.matmul %1, %2, %cst {dimension_numbers = #tpu.dot_dimension_numbers<[1], [0], [0], [1], [0, 0, 1, 1], [], []>} : vector<128x128xf32>, vector<128x1536xf32>, vector<128x1536xf32> -> vector<128x1536xf32>
    %4 = vector.shape_cast %3 : vector<128x1536xf32> to vector<8x16x1536xf32>
    %c0_4 = arith.constant 0 : index
    %c0_5 = arith.constant 0 : index
    %5 = vector.load %arg3[%c0_4, %c0_5] : memref<3x128xf32, #tpu.memory_space<vmem>>, vector<3x128xf32>
    %6 = tpu.iota {dimensions = array<i32: 1>} : vector<8x16x128xi32>
    %7 = vector.extract_strided_slice %4 {offsets = [0, 0, 0], sizes = [8, 16, 128], strides = [1, 1, 1]} : vector<8x16x1536xf32> to vector<8x16x128xf32>
    %8 = vector.extract_strided_slice %4 {offsets = [0, 0, 128], sizes = [8, 16, 128], strides = [1, 1, 1]} : vector<8x16x1536xf32> to vector<8x16x128xf32>
    %c15_i32 = arith.constant 15 : i32
    %9 = tpu.dynamic_rotate %8 by %c15_i32 dim 1 : vector<8x16x128xf32>, i32 -> vector<8x16x128xf32>
    %10 = arith.addf %7, %9 : vector<8x16x128xf32>
    %11 = vector.extract_strided_slice %4 {offsets = [0, 0, 256], sizes = [8, 16, 128], strides = [1, 1, 1]} : vector<8x16x1536xf32> to vector<8x16x128xf32>
    %c14_i32 = arith.constant 14 : i32
    %12 = tpu.dynamic_rotate %11 by %c14_i32 dim 1 : vector<8x16x128xf32>, i32 -> vector<8x16x128xf32>
    %13 = arith.addf %10, %12 : vector<8x16x128xf32>
    %c14_i32_6 = arith.constant 14 : i32
    %14 = vector.broadcast %c14_i32_6 : i32 to vector<8x16x128xi32>
    %15 = arith.cmpi slt, %6, %14 : vector<8x16x128xi32>
    %cst_7 = arith.constant 0xFF800000 : f32
    %16 = vector.broadcast %cst_7 : f32 to vector<8x16x128xf32>
    %17 = arith.select %15, %13, %16 : vector<8x16x128xi1>, vector<8x16x128xf32>
    %cst_8 = arith.constant dense<0xFF800000> : vector<8x128xf32>
    %18 = vector.multi_reduction <maximumf>, %17, %cst_8 [1] : vector<8x16x128xf32> to vector<8x128xf32>
    %19 = vector.extract_strided_slice %5 {offsets = [0, 0], sizes = [1, 128], strides = [1, 1]} : vector<3x128xf32> to vector<1x128xf32>
    %20 = vector.broadcast %19 : vector<1x128xf32> to vector<8x128xf32>
    %21 = arith.addf %18, %20 : vector<8x128xf32>
    %cst_9 = arith.constant 0.000000e+00 : f32
    %22 = vector.broadcast %cst_9 : f32 to vector<8x128xf32>
    %23 = arith.maximumf %21, %22 : vector<8x128xf32>
    %24 = vector.extract_strided_slice %4 {offsets = [0, 0, 384], sizes = [8, 16, 128], strides = [1, 1, 1]} : vector<8x16x1536xf32> to vector<8x16x128xf32>
    %25 = vector.extract_strided_slice %4 {offsets = [0, 0, 512], sizes = [8, 16, 128], strides = [1, 1, 1]} : vector<8x16x1536xf32> to vector<8x16x128xf32>
    %c15_i32_10 = arith.constant 15 : i32
    %26 = tpu.dynamic_rotate %25 by %c15_i32_10 dim 1 : vector<8x16x128xf32>, i32 -> vector<8x16x128xf32>
    %27 = arith.addf %24, %26 : vector<8x16x128xf32>
    %28 = vector.extract_strided_slice %4 {offsets = [0, 0, 640], sizes = [8, 16, 128], strides = [1, 1, 1]} : vector<8x16x1536xf32> to vector<8x16x128xf32>
    %c14_i32_11 = arith.constant 14 : i32
    %29 = tpu.dynamic_rotate %28 by %c14_i32_11 dim 1 : vector<8x16x128xf32>, i32 -> vector<8x16x128xf32>
    %30 = arith.addf %27, %29 : vector<8x16x128xf32>
    %31 = vector.extract_strided_slice %4 {offsets = [0, 0, 768], sizes = [8, 16, 128], strides = [1, 1, 1]} : vector<8x16x1536xf32> to vector<8x16x128xf32>
    %c13_i32 = arith.constant 13 : i32
    %32 = tpu.dynamic_rotate %31 by %c13_i32 dim 1 : vector<8x16x128xf32>, i32 -> vector<8x16x128xf32>
    %33 = arith.addf %30, %32 : vector<8x16x128xf32>
    %c13_i32_12 = arith.constant 13 : i32
    %34 = vector.broadcast %c13_i32_12 : i32 to vector<8x16x128xi32>
    %35 = arith.cmpi slt, %6, %34 : vector<8x16x128xi32>
    %cst_13 = arith.constant 0xFF800000 : f32
    %36 = vector.broadcast %cst_13 : f32 to vector<8x16x128xf32>
    %37 = arith.select %35, %33, %36 : vector<8x16x128xi1>, vector<8x16x128xf32>
    %cst_14 = arith.constant dense<0xFF800000> : vector<8x128xf32>
    %38 = vector.multi_reduction <maximumf>, %37, %cst_14 [1] : vector<8x16x128xf32> to vector<8x128xf32>
    %39 = vector.extract_strided_slice %5 {offsets = [1, 0], sizes = [1, 128], strides = [1, 1]} : vector<3x128xf32> to vector<1x128xf32>
    %40 = vector.broadcast %39 : vector<1x128xf32> to vector<8x128xf32>
    %41 = arith.addf %38, %40 : vector<8x128xf32>
    %cst_15 = arith.constant 0.000000e+00 : f32
    %42 = vector.broadcast %cst_15 : f32 to vector<8x128xf32>
    %43 = arith.maximumf %41, %42 : vector<8x128xf32>
    %44 = vector.extract_strided_slice %4 {offsets = [0, 0, 896], sizes = [8, 16, 128], strides = [1, 1, 1]} : vector<8x16x1536xf32> to vector<8x16x128xf32>
    %45 = vector.extract_strided_slice %4 {offsets = [0, 0, 1024], sizes = [8, 16, 128], strides = [1, 1, 1]} : vector<8x16x1536xf32> to vector<8x16x128xf32>
    %c15_i32_16 = arith.constant 15 : i32
    %46 = tpu.dynamic_rotate %45 by %c15_i32_16 dim 1 : vector<8x16x128xf32>, i32 -> vector<8x16x128xf32>
    %47 = arith.addf %44, %46 : vector<8x16x128xf32>
    %48 = vector.extract_strided_slice %4 {offsets = [0, 0, 1152], sizes = [8, 16, 128], strides = [1, 1, 1]} : vector<8x16x1536xf32> to vector<8x16x128xf32>
    %c14_i32_17 = arith.constant 14 : i32
    %49 = tpu.dynamic_rotate %48 by %c14_i32_17 dim 1 : vector<8x16x128xf32>, i32 -> vector<8x16x128xf32>
    %50 = arith.addf %47, %49 : vector<8x16x128xf32>
    %51 = vector.extract_strided_slice %4 {offsets = [0, 0, 1280], sizes = [8, 16, 128], strides = [1, 1, 1]} : vector<8x16x1536xf32> to vector<8x16x128xf32>
    %c13_i32_18 = arith.constant 13 : i32
    %52 = tpu.dynamic_rotate %51 by %c13_i32_18 dim 1 : vector<8x16x128xf32>, i32 -> vector<8x16x128xf32>
    %53 = arith.addf %50, %52 : vector<8x16x128xf32>
    %54 = vector.extract_strided_slice %4 {offsets = [0, 0, 1408], sizes = [8, 16, 128], strides = [1, 1, 1]} : vector<8x16x1536xf32> to vector<8x16x128xf32>
    %c12_i32 = arith.constant 12 : i32
    %55 = tpu.dynamic_rotate %54 by %c12_i32 dim 1 : vector<8x16x128xf32>, i32 -> vector<8x16x128xf32>
    %56 = arith.addf %53, %55 : vector<8x16x128xf32>
    %c12_i32_19 = arith.constant 12 : i32
    %57 = vector.broadcast %c12_i32_19 : i32 to vector<8x16x128xi32>
    %58 = arith.cmpi slt, %6, %57 : vector<8x16x128xi32>
    %cst_20 = arith.constant 0xFF800000 : f32
    %59 = vector.broadcast %cst_20 : f32 to vector<8x16x128xf32>
    %60 = arith.select %58, %56, %59 : vector<8x16x128xi1>, vector<8x16x128xf32>
    %cst_21 = arith.constant dense<0xFF800000> : vector<8x128xf32>
    %61 = vector.multi_reduction <maximumf>, %60, %cst_21 [1] : vector<8x16x128xf32> to vector<8x128xf32>
    %62 = vector.extract_strided_slice %5 {offsets = [2, 0], sizes = [1, 128], strides = [1, 1]} : vector<3x128xf32> to vector<1x128xf32>
    %63 = vector.broadcast %62 : vector<1x128xf32> to vector<8x128xf32>
    %64 = arith.addf %61, %63 : vector<8x128xf32>
    %cst_22 = arith.constant 0.000000e+00 : f32
    %65 = vector.broadcast %cst_22 : f32 to vector<8x128xf32>
    %66 = arith.maximumf %64, %65 : vector<8x128xf32>
    %67 = tpu.concatenate %23, %43, %66 in 1 : vector<8x128xf32>, vector<8x128xf32>, vector<8x128xf32> -> vector<8x384xf32>
    %c0_23 = arith.constant 0 : index
    %c0_24 = arith.constant 0 : index
    %68 = vector.load %arg4[%c0_23, %c0_24] : memref<384x128xf32, #tpu.memory_space<vmem>>, vector<384x128xf32>
    %cst_25 = arith.constant dense<0.000000e+00> : vector<8x128xf32>
    %69 = tpu.matmul %67, %68, %cst_25 {dimension_numbers = #tpu.dot_dimension_numbers<[1], [0], [0], [1], [0, 0, 1, 1], [], []>} : vector<8x384xf32>, vector<384x128xf32>, vector<8x128xf32> -> vector<8x128xf32>
    %c0_26 = arith.constant 0 : index
    %c0_27 = arith.constant 0 : index
    %70 = vector.load %arg5[%c0_26, %c0_27] : memref<1x128xf32, #tpu.memory_space<vmem>>, vector<1x128xf32>
    %71 = vector.broadcast %70 : vector<1x128xf32> to vector<8x128xf32>
    %72 = arith.addf %69, %71 : vector<8x128xf32>
    %c0_28 = arith.constant 0 : index
    %c0_29 = arith.constant 0 : index
    %73 = vector.load %arg6[%c0_28, %c0_29] : memref<8x128xf32, #tpu.memory_space<vmem>>, vector<8x128xf32>
    tpu.vector_store %arg6[%c0_28, %c0_29], %72 {strides = array<i32>} : memref<8x128xf32, #tpu.memory_space<vmem>>, vector<8x128xf32>,
    return
  }
  func.func @transform_0(%arg0: i32) -> (i32, i32, i32) {
    %c0_i32 = arith.constant 0 : i32
    %c0_i32_0 = arith.constant 0 : i32
    %c0_i32_1 = arith.constant 0 : i32
    return %arg0, %c0_i32, %c0_i32_0 : i32, i32, i32
  }
  func.func @transform_1(%arg0: i32) -> (i32, i32) {
    %c0_i32 = arith.constant 0 : i32
    %c0_i32_0 = arith.constant 0 : i32
    %c0_i32_1 = arith.constant 0 : i32
    return %c0_i32, %c0_i32_0 : i32, i32
  }
  func.func @transform_2(%arg0: i32) -> (i32, i32) {
    %c0_i32 = arith.constant 0 : i32
    %c0_i32_0 = arith.constant 0 : i32
    %c0_i32_1 = arith.constant 0 : i32
    return %c0_i32, %c0_i32_0 : i32, i32
  }
  func.func @transform_3(%arg0: i32) -> (i32, i32) {
    %c0_i32 = arith.constant 0 : i32
    %c0_i32_0 = arith.constant 0 : i32
    %c0_i32_1 = arith.constant 0 : i32
    return %c0_i32, %c0_i32_0 : i32, i32
  }
  func.func @transform_4(%arg0: i32) -> (i32, i32) {
    %c0_i32 = arith.constant 0 : i32
    %c0_i32_0 = arith.constant 0 : i32
    %c0_i32_1 = arith.constant 0 : i32
    return %c0_i32, %c0_i32_0 : i32, i32
  }
  func.func @transform_5(%arg0: i32) -> (i32, i32) {
    %c0_i32 = arith.constant 0 : i32
    %c0_i32_0 = arith.constant 0 : i32
    return %arg0, %c0_i32 : i32, i32
  }
}

</mosaic_0001>

<bundles_post_ra>
// kernel: tpu_custom_call.1
= control target key start
LH: loop header
LB: loop body
LE: loop exit
PB: predicated region body
PF: predicated region fallthrough
CT: control target
= control target key end

     0   :  { %10 = vsyncpa [#allocation3], 0  ;;  %s3576_s0 = inlined_call_operand.hbm [shape: f32[32,16,128], index: 0, kind: input, shape index: {}]   ;;  %s3577_s1 = inlined_call_operand.hbm [shape: f32[128,1536], index: 1, kind: input, shape index: {}]   ;;  %s3578_s2 = inlined_call_operand.hbm [shape: f32[3,128], index: 2, kind: input, shape index: {}]   ;;  %s3579_s3 = inlined_call_operand.hbm [shape: f32[384,128], index: 3, kind: input, shape index: {}]   ;;  %s3580_s4 = inlined_call_operand.vmem [shape: f32[1,128], index: 4, kind: input, shape index: {}]   ;;  %s3581_s5 = inlined_call_operand.hbm [shape: f32[32,128], index: 5, kind: output, shape index: {}]  }
   0x1   :  { %12 = vsyncpa [#allocation3 + $0x1], 0 }
   0x2   :  { %13 = vsyncpa [#allocation6], 0 }
   0x3   :  { %14 = vsyncpa [#allocation9], 0 }
   0x4   :  { %15 = vsyncpa [#allocation4], 0 }
   0x5   :  { %17 = vsyncpa [#allocation4 + $0x1], 0  ;;  %s2654_s18 = smov 0   ;;  %s2656_s19 = smov 0  }
   0x6   :  { %s2658_s20 = smov 0   ;;  %s2660_s21 = smov 0  }
   0x7 LB: > { %s2675_s22 = sadd.s32 4294967295, %s2615_s21   ;;  %s2300_s23 = sadd.s32 4294967294, %s2615_s21   ;;  %s2615_s21 = sphi %s2660_s21, %s3593_s21   ;;  %s2611_s20 = sphi %s2658_s20, %s3592_s20   ;;  %s2607_s19 = sphi %s2656_s19, %s3591_s19   ;;  %s2603_s18 = sphi %s2654_s18, %s3590_s18  }
   0x8   : > { %p43_p0 = scmp.ne.s32.totalorder %s2607_s19, %s2603_s18  ;;  %p44_p1 = scmp.eq.s32.totalorder %s2675_s22, 0 }
   0x9   : > { %p151_p2 = scmp.eq.s32.totalorder %s2675_s22, 3  ;;  %p157_p3 = scmp.eq.s32.totalorder %s2300_s23, 3 }
   0xa   : > { %p2684_p4 = por %p44_p1, %p43_p0  ;;  %p2301_p5 = scmp.ge.s32.totalorder %s2615_s21, 1 }
   0xb   : > { %p2689_p6 = por %p157_p3, %p43_p0  ;;  %p164_p7 = scmp.lt.s32.totalorder %s2615_s21, 5 }
   0xc   : > { %s175_s28 = sshll.u32 %s3577_s1, 4  ;;  %s2617_s30 = smov [#allocation5]   ;;  %s176_s28 = int_to_ptr.hbm [resolvable:$true] %s175_s28 }
   0xd   : > { %p2697_p8 = pnand %p2301_p5, %p164_p7  ;;  %s177_s6 = sshll.u32 %s2617_s30, 4  ;;  %s178_s6 = int_to_ptr.vmem [resolvable:$true] %s177_s6 }
   0xe   : > { %s190_s10 = sshll.u32 %s3578_s2, 4  ;;  %s2618_s11 = smov 1536   ;;  %s191_s10 = int_to_ptr.hbm [resolvable:$true] %s190_s10 }
   0xf   : > { %p2338_p9 = pneg %p2697_p8  ;;  %s2619_s12 = smov 96  }
  0x10   : > { %s2620_s13 = smov [#allocation7]   ;;  %s201_s17 = sshll.u32 %s3579_s3, 4  ;;  %s202_s17 = int_to_ptr.hbm [resolvable:$true] %s201_s17 }
  0x11   : > { %p2705_p10 = pnand %p2338_p9, %p44_p1  ;;  %s192_s14 = sshll.u32 %s2620_s13, 4  ;;  %s193_s14 = int_to_ptr.vmem [resolvable:$true] %s192_s14 }
  0x12   : > { %s2621_s23 = smov [#allocation8]   ;;  %s3582_s27 = smov 128  }
  0x13   : > { %2341 = dma.hbm_to_vmem [thread:$0]  (!%p2705_p10), %s176_s28, 24576, %s178_s6, [#allocation6], %s2618_s11, %s2618_s11, %s2619_s12  }
  0x14   : > { %2344 = dma.hbm_to_vmem [thread:$0]  (!%p2705_p10), %s191_s10, 64, %s193_s14, [#allocation6]  }
  0x15   : > { %s203_s26 = sshll.u32 %s2621_s23, 4  ;;  %s2623_s28 = smov 8   ;;  %s204_s26 = int_to_ptr.vmem [resolvable:$true] %s203_s26 }
  0x16   : > { %2347 = dma.hbm_to_vmem [thread:$0]  (!%p2705_p10), %s202_s17, 6144, %s204_s26, [#allocation9], %s3582_s27, %s3582_s27, %s2623_s28  }
  0x17   : > { %s2725_s30 = sadd.s32 1, %s2615_s21   ;;  %s30_s8 = sadd.s32 1, %s2611_s20 }
  0x18   : > { %s27_s6 = ssub.s32 %s2615_s21, %s2725_s30  ;;  %p37_p12 = scmp.ne.s32.totalorder %s2611_s20, %s2607_s19 }
  0x19   : > { %p28_p11 = scmp.eq.s32.totalorder %s27_s6, 0  ;;  %p38_p13 = scmp.eq.s32.totalorder %s2615_s21, 0 }
  0x1a   : > { %p2738_p0 = por %p151_p2, %p37_p12  ;;  %p2359_p3 = scmp.lt.s32.totalorder %s2615_s21, 4 }
  0x1b   : > { %s2734_s9 = scalar_select %p28_p11, %s2611_s20, %s30_s8  }
  0x1c   : > { %s220_s7 = sand.u32 1, %s2611_s20   ;;  %s2321_s11 = sshll.u32 %s2615_s21, 7 }
  0x1d   : > { %p39_p5 = por %p38_p13, %p37_p12  ;;  %s2306_s12 = sshll.u32 %s220_s7, 7 }
  0x1e   : > { %s230_s15 = scalar_lea.hbm %s3576_s0, %s2321_s11  ;;  %s224_s17 = scalar_lea.vmem [#allocation2], %s2306_s12 }
  0x1f   : > { %s231_s16 = sshll.u32 %s230_s15, 4  ;;  %s233_s23 = sshll.u32 %s224_s17, 4  ;;  %s232_s16 = int_to_ptr.hbm [resolvable:$true] %s231_s16  ;;  %s234_s23 = int_to_ptr.vmem [resolvable:$true] %s233_s23 }
  0x20   : > { %p2748_p7 = pnand %p2359_p3, %p39_p5  ;;  %s221_s6 = scalar_lea.sflag [#allocation3], %s220_s7 }
  0x21   : > { %s2511_s8 = sshra.s32 %s232_s16, 4  ;;  %s2518_s12 = scalar_lea.hbm %s3576_s0, 512  ;;  %s2512_s8 = int_to_ptr.hbm [resolvable:$true] %s2511_s8 }
  0x22   : > { %s2513_s27 = scalar_lea.hbm %s2512_s8, 128  ;;  %p2515_p9 = pneg %p2748_p7 }
  0x23   : > { %p2514_p2 = scmp.ne.s32.totalorder %s2512_s8, %s2513_s27  ;;  %p2519_p12 = scmp.lt.s32.totalorder %s2512_s8, %s3576_s0 }
  0x24   : > { %p2520_p13 = scmp.lt.s32.totalorder %s2518_s12, %s2513_s27 }
  0x25   : > { %p2516_p10 = pnand %p2515_p9, %p2514_p2 }
  0x26   : > { %p2521_p3 = por %p2520_p13, %p2519_p12 }
  0x27   : > { %p2517_p11 = pneg %p2516_p10 }
  0x29   : > { %p2522_p5 = pnand %p2521_p3, %p2517_p11 }
  0x2b   : > { %2525 = shalt.err (!%p2522_p5)
}
  0x2c   : > { %s3589_s7 = smov 128   ;;  %245 = sbr.rel (%p2697_p8) target bundleno = 762 (0x2fa), region = 40 }
  0x2d   : > { %2351 = dma.hbm_to_vmem [thread:$0]  (!%p2748_p7), %s232_s16, 2048, %s234_s23, %s221_s6, %s3589_s7, %s3589_s7, %s2623_s28  }
  0x2e   : > { %s2768_s17 = sand.u32 (!%p2697_p8), 1, %s2607_s19  }
  0x2f   : > { %s2311_s8 = sshll.u32 (!%p2697_p8), %s2768_s17, 7  ;;  %s248_s27 = scalar_lea.sflag (!%p2697_p8), [#allocation3], %s2768_s17 }
  0x30   : > { %s2772_s11 = scalar_lea.vmem (!%p2697_p8), [#allocation2], %s2311_s8 }
  0x31   : > { %2586 = dma.done.wait (%p2684_p4), %s248_s27, 2048  }
  0x32   : > { %2588 = vsyncadd (%p2684_p4), %s248_s27, 4294965248 }
  0x33   : > { %2590 = dma.done.wait (%p44_p1), [#allocation6], 24640  }
  0x34   : > { %2592 = vsyncadd (%p44_p1), [#allocation6], 4294942656 }
  0x35   : > { %2594 = dma.done.wait (%p44_p1), [#allocation9], 6144  }
  0x36   : > { %2596 = vsyncadd (%p44_p1), [#allocation9], 4294961152  ;;  %v491_v0 = vld [vmem:[#allocation5 + $0x5a0] sm:$0xff]  ;;  %v492_v1 = vld [vmem:[#allocation5 + $0x5a8] sm:$0xff]  ;;  %vm2005_vm3 = vcmask 1041409   ;;  %vm2008_vm4 = vcmask 1042434  }
  0x37   : > { %v493_v2 = vld [vmem:[#allocation5 + $0x5b0] sm:$0xff]  ;;  %503 = vmatpush.msra.mxu0 %v491_v0  ;;  %568 = vmatpush.msra.mxu1 %v492_v1  ;;  %v494_v3 = vld [vmem:[#allocation5 + $0x5b8] sm:$0xff]  ;;  %v479_v4 = vld [vmem:[#allocation5 + $0x540] sm:$0xff]  ;;  %vm2011_vm5 = vcmask 1043459   ;;  %vm2014_vm6 = vcmask 1044484   ;;  %vm2017_vm7 = vcmask 1045509  }
  0x38   : > { %v480_v5 = vld [vmem:[#allocation5 + $0x548] sm:$0xff]  ;;  %633 = vmatpush.msra.mxu2 %v493_v2  ;;  %698 = vmatpush.msra.mxu3 %v494_v3  ;;  %v481_v6 = vld [vmem:[#allocation5 + $0x550] sm:$0xff]  ;;  %v482_v7 = vld [vmem:[#allocation5 + $0x558] sm:$0xff]  ;;  %vm2020_vm8 = vcmask 1046534   ;;  %vm2023_vm11 = vcmask 1047559   ;;  %s2315_s24 = sshll.u32 %s2768_s17, 3 }
  0x39   : > { %v467_v8 = vld [vmem:[#allocation5 + $0x4e0] sm:$0xff]  ;;  %504 = vmatpush.msra.mxu0 %v479_v4  ;;  %569 = vmatpush.msra.mxu1 %v480_v5  ;;  %v468_v9 = vld [vmem:[#allocation5 + $0x4e8] sm:$0xff]  ;;  %v469_v10 = vld [vmem:[#allocation5 + $0x4f0] sm:$0xff]  ;;  %s2317_s29 = sshll.u32 %s2675_s22, 3  ;;  %s293_s13 = scalar_lea.vmem [#allocation10], %s2315_s24 }
  0x3a   : > { %v470_v11 = vld [vmem:[#allocation5 + $0x4f8] sm:$0xff]  ;;  %634 = vmatpush.msra.mxu2 %v481_v6  ;;  %699 = vmatpush.msra.mxu3 %v482_v7  ;;  %v455_v12 = vld [vmem:[#allocation5 + $0x480] sm:$0xff]  ;;  %v456_v13 = vld [vmem:[#allocation5 + $0x488] sm:$0xff]  ;;  %s2196_s6 = scalar_lea.hbm %s3581_s5, %s2317_s29  ;;  %s2198_s12 = sshll.u32 %s293_s13, 4  ;;  %s2199_s12 = int_to_ptr.vmem [resolvable:$true] %s2198_s12 }
  0x3b   : > { %505 = vmatpush.msra.mxu0 %v467_v8  ;;  %570 = vmatpush.msra.mxu1 %v468_v9  ;;  %v457_v14 = vld [vmem:[#allocation5 + $0x490] sm:$0xff]  ;;  %v458_v15 = vld [vmem:[#allocation5 + $0x498] sm:$0xff]  ;;  %v443_v16 = vld [vmem:[#allocation5 + $0x420] sm:$0xff]  ;;  %s2200_s14 = sshll.u32 %s2196_s6, 4  ;;  %s2186_s22 = scalar_lea.sflag [#allocation4], %s2768_s17  ;;  %s2201_s14 = int_to_ptr.hbm [resolvable:$true] %s2200_s14 }
  0x3c   : > { %635 = vmatpush.msra.mxu2 %v469_v10  ;;  %700 = vmatpush.msra.mxu3 %v470_v11  ;;  %v444_v17 = vld [vmem:[#allocation5 + $0x428] sm:$0xff]  ;;  %v445_v18 = vld [vmem:[#allocation5 + $0x430] sm:$0xff]  ;;  %v446_v19 = vld [vmem:[#allocation5 + $0x438] sm:$0xff]  ;;  %s2555_s15 = sshra.s32 %s2201_s14, 4  ;;  %s2556_s15 = int_to_ptr.hbm [resolvable:$true] %s2555_s15 }
  0x3d   : > { %506 = vmatpush.msra.mxu0 %v455_v12  ;;  %571 = vmatpush.msra.mxu1 %v456_v13  ;;  %v431_v20 = vld [vmem:[#allocation5 + $0x3c0] sm:$0xff]  ;;  %v432_v21 = vld [vmem:[#allocation5 + $0x3c8] sm:$0xff]  ;;  %v433_v22 = vld [vmem:[#allocation5 + $0x3d0] sm:$0xff]  ;;  %s2557_s7 = scalar_lea.hbm %s2556_s15, 8  ;;  %p2562_p7 = scmp.lt.s32.totalorder %s2556_s15, %s3581_s5 }
  0x3e   : > { %636 = vmatpush.msra.mxu2 %v457_v14  ;;  %701 = vmatpush.msra.mxu3 %v458_v15  ;;  %v434_v23 = vld [vmem:[#allocation5 + $0x3d8] sm:$0xff]  ;;  %v419_v24 = vld [vmem:[#allocation5 + $0x360] sm:$0xff]  ;;  %v420_v25 = vld [vmem:[#allocation5 + $0x368] sm:$0xff]  ;;  %p2558_p1 = scmp.ne.s32.totalorder %s2556_s15, %s2557_s7 }
  0x3f   : > { %507 = vmatpush.msra.mxu0 %v443_v16  ;;  %572 = vmatpush.msra.mxu1 %v444_v17  ;;  %v421_v26 = vld [vmem:[#allocation5 + $0x370] sm:$0xff]  ;;  %v422_v27 = vld [vmem:[#allocation5 + $0x378] sm:$0xff]  ;;  %v407_v28 = vld [vmem:[#allocation5 + $0x300] sm:$0xff] }
  0x40   : > { %637 = vmatpush.msra.mxu2 %v445_v18  ;;  %702 = vmatpush.msra.mxu3 %v446_v19  ;;  %v408_v29 = vld [vmem:[#allocation5 + $0x308] sm:$0xff]  ;;  %v409_v30 = vld [vmem:[#allocation5 + $0x310] sm:$0xff]  ;;  %v410_v31 = vld [vmem:[#allocation5 + $0x318] sm:$0xff]  ;;  %p2559_p4 = pnand %p2558_p1, %p2738_p0 }
  0x41   : > { %508 = vmatpush.msra.mxu0 %v431_v20  ;;  %573 = vmatpush.msra.mxu1 %v432_v21  ;;  %v395_v32 = vld [vmem:[#allocation5 + $0x2a0] sm:$0xff]  ;;  %v396_v33 = vld [vmem:[#allocation5 + $0x2a8] sm:$0xff]  ;;  %v397_v34 = vld [vmem:[#allocation5 + $0x2b0] sm:$0xff] }
  0x42   : > { %638 = vmatpush.msra.mxu2 %v433_v22  ;;  %703 = vmatpush.msra.mxu3 %v434_v23  ;;  %v398_v35 = vld [vmem:[#allocation5 + $0x2b8] sm:$0xff]  ;;  %v383_v36 = vld [vmem:[#allocation5 + $0x240] sm:$0xff]  ;;  %v384_v37 = vld [vmem:[#allocation5 + $0x248] sm:$0xff]  ;;  %p2560_p8 = pneg %p2559_p4 }
  0x43   : > { %509 = vmatpush.msra.mxu0 %v419_v24  ;;  %574 = vmatpush.msra.mxu1 %v420_v25  ;;  %v385_v38 = vld [vmem:[#allocation5 + $0x250] sm:$0xff]  ;;  %v386_v39 = vld [vmem:[#allocation5 + $0x258] sm:$0xff]  ;;  %v371_v40 = vld [vmem:[#allocation5 + $0x1e0] sm:$0xff] }
  0x44   : > { %639 = vmatpush.msra.mxu2 %v421_v26  ;;  %704 = vmatpush.msra.mxu3 %v422_v27  ;;  %v372_v41 = vld [vmem:[#allocation5 + $0x1e8] sm:$0xff]  ;;  %v373_v42 = vld [vmem:[#allocation5 + $0x1f0] sm:$0xff]  ;;  %v374_v43 = vld [vmem:[#allocation5 + $0x1f8] sm:$0xff] }
  0x45   : > { %510 = vmatpush.msra.mxu0 %v407_v28  ;;  %575 = vmatpush.msra.mxu1 %v408_v29  ;;  %v359_v44 = vld [vmem:[#allocation5 + $0x180] sm:$0xff]  ;;  %v360_v45 = vld [vmem:[#allocation5 + $0x188] sm:$0xff]  ;;  %v361_v46 = vld [vmem:[#allocation5 + $0x190] sm:$0xff] }
  0x46   : > { %640 = vmatpush.msra.mxu2 %v409_v30  ;;  %705 = vmatpush.msra.mxu3 %v410_v31  ;;  %v362_v47 = vld [vmem:[#allocation5 + $0x198] sm:$0xff]  ;;  %v347_v48 = vld [vmem:[#allocation5 + $0x120] sm:$0xff]  ;;  %v348_v49 = vld [vmem:[#allocation5 + $0x128] sm:$0xff] }
  0x47   : > { %511 = vmatpush.msra.mxu0 %v395_v32  ;;  %576 = vmatpush.msra.mxu1 %v396_v33  ;;  %v349_v50 = vld [vmem:[#allocation5 + $0x130] sm:$0xff]  ;;  %v350_v51 = vld [vmem:[#allocation5 + $0x138] sm:$0xff]  ;;  %v335_v52 = vld [vmem:[#allocation5 + $0xc0] sm:$0xff] }
  0x48   : > { %641 = vmatpush.msra.mxu2 %v397_v34  ;;  %706 = vmatpush.msra.mxu3 %v398_v35  ;;  %v336_v53 = vld [vmem:[#allocation5 + $0xc8] sm:$0xff]  ;;  %v337_v54 = vld [vmem:[#allocation5 + $0xd0] sm:$0xff]  ;;  %v338_v55 = vld [vmem:[#allocation5 + $0xd8] sm:$0xff] }
  0x49   : > { %512 = vmatpush.msra.mxu0 %v383_v36  ;;  %577 = vmatpush.msra.mxu1 %v384_v37  ;;  %v323_v56 = vld [vmem:[#allocation5 + $0x60] sm:$0xff]  ;;  %v324_v57 = vld [vmem:[#allocation5 + $0x68] sm:$0xff]  ;;  %v325_v58 = vld [vmem:[#allocation5 + $0x70] sm:$0xff] }
  0x4a   : > { %642 = vmatpush.msra.mxu2 %v385_v38  ;;  %707 = vmatpush.msra.mxu3 %v386_v39  ;;  %v326_v59 = vld [vmem:[#allocation5 + $0x78] sm:$0xff]  ;;  %v311_v60 = vld [vmem:[#allocation5] sm:$0xff]  ;;  %v312_v61 = vld [vmem:[#allocation5 + $0x8] sm:$0xff] }
  0x4b   : > { %513 = vmatpush.msra.mxu0 %v371_v40  ;;  %578 = vmatpush.msra.mxu1 %v372_v41  ;;  %v313_v62 = vld [vmem:[#allocation5 + $0x10] sm:$0xff]  ;;  %v314_v63 = vld [vmem:[#allocation5 + $0x18] sm:$0xff]  ;;  %v2787_v0 = vld [vmem:[%s2772_s11] sm:$0xff] }
  0x4c   : > { %643 = vmatpush.msra.mxu2 %v373_v42  ;;  %708 = vmatpush.msra.mxu3 %v374_v43  ;;  %v497_v1 = vld [vmem:[#allocation5 + $0x5d0] sm:$0xff]  ;;  %v495_v2 = vld [vmem:[#allocation5 + $0x5c0] sm:$0xff]  ;;  %v498_v3 = vld [vmem:[#allocation5 + $0x5d8] sm:$0xff] }
  0x4d   : > { %514 = vmatpush.msra.mxu0 %v359_v44  ;;  %579 = vmatpush.msra.mxu1 %v360_v45  ;;  %v496_v4 = vld [vmem:[#allocation5 + $0x5c8] sm:$0xff]  ;;  %v485_v5 = vld [vmem:[#allocation5 + $0x570] sm:$0xff]  ;;  %v483_v6 = vld [vmem:[#allocation5 + $0x560] sm:$0xff] }
  0x4e   : > { %644 = vmatpush.msra.mxu2 %v361_v46  ;;  %709 = vmatpush.msra.mxu3 %v362_v47  ;;  %v486_v7 = vld [vmem:[#allocation5 + $0x578] sm:$0xff]  ;;  %v484_v8 = vld [vmem:[#allocation5 + $0x568] sm:$0xff]  ;;  %v473_v9 = vld [vmem:[#allocation5 + $0x510] sm:$0xff] }
  0x4f   : > { %515 = vmatpush.msra.mxu0 %v347_v48  ;;  %580 = vmatpush.msra.mxu1 %v348_v49  ;;  %v471_v10 = vld [vmem:[#allocation5 + $0x500] sm:$0xff]  ;;  %v474_v11 = vld [vmem:[#allocation5 + $0x518] sm:$0xff]  ;;  %v472_v12 = vld [vmem:[#allocation5 + $0x508] sm:$0xff] }
  0x50   : > { %645 = vmatpush.msra.mxu2 %v349_v50  ;;  %710 = vmatpush.msra.mxu3 %v350_v51  ;;  %v2794_v13 = vld [vmem:[%s2772_s11 + $0x8] sm:$0xff]  ;;  %v461_v14 = vld [vmem:[#allocation5 + $0x4b0] sm:$0xff]  ;;  %v459_v15 = vld [vmem:[#allocation5 + $0x4a0] sm:$0xff] }
  0x51   : > { %516 = vmatpush.msra.mxu0 %v335_v52  ;;  %581 = vmatpush.msra.mxu1 %v336_v53  ;;  %v462_v16 = vld [vmem:[#allocation5 + $0x4b8] sm:$0xff]  ;;  %v460_v17 = vld [vmem:[#allocation5 + $0x4a8] sm:$0xff]  ;;  %v449_v18 = vld [vmem:[#allocation5 + $0x450] sm:$0xff] }
  0x52   : > { %646 = vmatpush.msra.mxu2 %v337_v54  ;;  %711 = vmatpush.msra.mxu3 %v338_v55  ;;  %v447_v19 = vld [vmem:[#allocation5 + $0x440] sm:$0xff]  ;;  %v450_v20 = vld [vmem:[#allocation5 + $0x458] sm:$0xff]  ;;  %v448_v21 = vld [vmem:[#allocation5 + $0x448] sm:$0xff] }
  0x53   : > { %517 = vmatpush.msra.mxu0 %v323_v56  ;;  %582 = vmatpush.msra.mxu1 %v324_v57  ;;  %v437_v22 = vld [vmem:[#allocation5 + $0x3f0] sm:$0xff]  ;;  %v435_v23 = vld [vmem:[#allocation5 + $0x3e0] sm:$0xff]  ;;  %v438_v24 = vld [vmem:[#allocation5 + $0x3f8] sm:$0xff] }
  0x54   : > { %647 = vmatpush.msra.mxu2 %v325_v58  ;;  %712 = vmatpush.msra.mxu3 %v326_v59  ;;  %v436_v25 = vld [vmem:[#allocation5 + $0x3e8] sm:$0xff]  ;;  %v2801_v26 = vld [vmem:[%s2772_s11 + $0x10] sm:$0xff]  ;;  %v423_v28 = vld [vmem:[#allocation5 + $0x380] sm:$0xff] }
  0x55   : > { %518 = vmatpush.msra.mxu0 %v311_v60  ;;  %583 = vmatpush.msra.mxu1 %v312_v61  ;;  %v425_v27 = vld [vmem:[#allocation5 + $0x390] sm:$0xff]  ;;  %v426_v29 = vld [vmem:[#allocation5 + $0x398] sm:$0xff]  ;;  %v424_v30 = vld [vmem:[#allocation5 + $0x388] sm:$0xff] }
  0x56   : > { %648 = vmatpush.msra.mxu2 %v313_v62  ;;  %713 = vmatpush.msra.mxu3 %v314_v63  ;;  %v2808_v31 = vld [vmem:[%s2772_s11 + $0x18] sm:$0xff]  ;;  %v413_v32 = vld [vmem:[#allocation5 + $0x330] sm:$0xff]  ;;  %v411_v33 = vld [vmem:[#allocation5 + $0x320] sm:$0xff] }
  0x57   : > { %519 = vmatmul.f32.vlgmr.msra.gmra.mxu0 %v2787_v0  ;;  %584 = vmatmul.f32.vlgmr.msra.gmra.mxu1 %v2787_v0  ;;  %v414_v34 = vld [vmem:[#allocation5 + $0x338] sm:$0xff]  ;;  %v412_v35 = vld [vmem:[#allocation5 + $0x328] sm:$0xff]  ;;  %v2815_v36 = vld [vmem:[%s2772_s11 + $0x20] sm:$0xff] }
  0x58   : > { %649 = vmatmul.f32.vlgmr.msra.gmra.mxu2 %v2787_v0  ;;  %714 = vmatmul.f32.vlgmr.msra.gmra.mxu3 %v2787_v0  ;;  %v401_v37 = vld [vmem:[#allocation5 + $0x2d0] sm:$0xff]  ;;  %v399_v38 = vld [vmem:[#allocation5 + $0x2c0] sm:$0xff]  ;;  %v402_v39 = vld [vmem:[#allocation5 + $0x2d8] sm:$0xff] }
  0x59   : > { %893 = vmatpush.msrb.mxu2 %v497_v1  ;;  %763 = vmatpush.msrb.mxu0 %v495_v2  ;;  %v400_v40 = vld [vmem:[#allocation5 + $0x2c8] sm:$0xff]  ;;  %v389_v42 = vld [vmem:[#allocation5 + $0x270] sm:$0xff]  ;;  %v387_v43 = vld [vmem:[#allocation5 + $0x260] sm:$0xff] }
  0x5a   : > { %958 = vmatpush.msrb.mxu3 %v498_v3  ;;  %828 = vmatpush.msrb.mxu1 %v496_v4  ;;  %v2822_v41 = vld [vmem:[%s2772_s11 + $0x28] sm:$0xff]  ;;  %v390_v44 = vld [vmem:[#allocation5 + $0x278] sm:$0xff]  ;;  %v2829_v46 = vld [vmem:[%s2772_s11 + $0x30] sm:$0xff] }
  0x5b   : > { %894 = vmatpush.msrb.mxu2 %v485_v5  ;;  %764 = vmatpush.msrb.mxu0 %v483_v6  ;;  %v388_v45 = vld [vmem:[#allocation5 + $0x268] sm:$0xff]  ;;  %v377_v47 = vld [vmem:[#allocation5 + $0x210] sm:$0xff]  ;;  %v375_v48 = vld [vmem:[#allocation5 + $0x200] sm:$0xff] }
  0x5c   : > { %959 = vmatpush.msrb.mxu3 %v486_v7  ;;  %829 = vmatpush.msrb.mxu1 %v484_v8  ;;  %v378_v49 = vld [vmem:[#allocation5 + $0x218] sm:$0xff]  ;;  %v376_v50 = vld [vmem:[#allocation5 + $0x208] sm:$0xff]  ;;  %v365_v52 = vld [vmem:[#allocation5 + $0x1b0] sm:$0xff] }
  0x5d   : > { %895 = vmatpush.msrb.mxu2 %v473_v9  ;;  %765 = vmatpush.msrb.mxu0 %v471_v10  ;;  %v2836_v51 = vld [vmem:[%s2772_s11 + $0x38] sm:$0xff]  ;;  %v363_v53 = vld [vmem:[#allocation5 + $0x1a0] sm:$0xff]  ;;  %v364_v55 = vld [vmem:[#allocation5 + $0x1a8] sm:$0xff] }
  0x5e   : > { %960 = vmatpush.msrb.mxu3 %v474_v11  ;;  %830 = vmatpush.msrb.mxu1 %v472_v12  ;;  %v366_v54 = vld [vmem:[#allocation5 + $0x1b8] sm:$0xff]  ;;  %v2843_v56 = vld [vmem:[%s2772_s11 + $0x40] sm:$0xff]  ;;  %v353_v57 = vld [vmem:[#allocation5 + $0x150] sm:$0xff] }
  0x5f   : > { %522 = vmatmul.f32.gmra.mxu0 %v2794_v13  ;;  %587 = vmatmul.f32.gmra.mxu1 %v2794_v13  ;;  %v351_v58 = vld [vmem:[#allocation5 + $0x140] sm:$0xff]  ;;  %v354_v59 = vld [vmem:[#allocation5 + $0x158] sm:$0xff]  ;;  %v352_v60 = vld [vmem:[#allocation5 + $0x148] sm:$0xff] }
  0x60   : > { %652 = vmatmul.f32.gmra.mxu2 %v2794_v13  ;;  %717 = vmatmul.f32.gmra.mxu3 %v2794_v13  ;;  %v2850_v61 = vld [vmem:[%s2772_s11 + $0x48] sm:$0xff]  ;;  %v341_v62 = vld [vmem:[#allocation5 + $0xf0] sm:$0xff]  ;;  %v339_v63 = vld [vmem:[#allocation5 + $0xe0] sm:$0xff] }
  0x61   : > { %896 = vmatpush.msrb.mxu2 %v461_v14  ;;  %766 = vmatpush.msrb.mxu0 %v459_v15  ;;  %v342_v1 = vld [vmem:[#allocation5 + $0xf8] sm:$0xff]  ;;  %v340_v2 = vld [vmem:[#allocation5 + $0xe8] sm:$0xff]  ;;  %v2857_v3 = vld [vmem:[%s2772_s11 + $0x50] sm:$0xff] }
  0x62   : > { %961 = vmatpush.msrb.mxu3 %v462_v16  ;;  %831 = vmatpush.msrb.mxu1 %v460_v17  ;;  %v329_v4 = vld [vmem:[#allocation5 + $0x90] sm:$0xff]  ;;  %v327_v5 = vld [vmem:[#allocation5 + $0x80] sm:$0xff]  ;;  %v330_v6 = vld [vmem:[#allocation5 + $0x98] sm:$0xff] }
  0x63   : > { %897 = vmatpush.msrb.mxu2 %v449_v18  ;;  %767 = vmatpush.msrb.mxu0 %v447_v19  ;;  %v328_v7 = vld [vmem:[#allocation5 + $0x88] sm:$0xff]  ;;  %v2864_v8 = vld [vmem:[%s2772_s11 + $0x58] sm:$0xff]  ;;  %v317_v9 = vld [vmem:[#allocation5 + $0x30] sm:$0xff] }
  0x64   : > { %962 = vmatpush.msrb.mxu3 %v450_v20  ;;  %832 = vmatpush.msrb.mxu1 %v448_v21  ;;  %v315_v10 = vld [vmem:[#allocation5 + $0x20] sm:$0xff]  ;;  %v318_v11 = vld [vmem:[#allocation5 + $0x38] sm:$0xff]  ;;  %v316_v12 = vld [vmem:[#allocation5 + $0x28] sm:$0xff] }
  0x65   : > { %898 = vmatpush.msrb.mxu2 %v437_v22  ;;  %768 = vmatpush.msrb.mxu0 %v435_v23  ;;  %v2871_v14 = vld [vmem:[%s2772_s11 + $0x60] sm:$0xff]  ;;  %v501_v15 = vld [vmem:[#allocation5 + $0x5f0] sm:$0xff]  ;;  %v502_v17 = vld [vmem:[#allocation5 + $0x5f8] sm:$0xff] }
  0x66   : > { %963 = vmatpush.msrb.mxu3 %v438_v24  ;;  %833 = vmatpush.msrb.mxu1 %v436_v25  ;;  %v499_v16 = vld [vmem:[#allocation5 + $0x5e0] sm:$0xff]  ;;  %v2878_v18 = vld [vmem:[%s2772_s11 + $0x68] sm:$0xff]  ;;  %v489_v20 = vld [vmem:[#allocation5 + $0x590] sm:$0xff] }
  0x67   : > { %525 = vmatmul.f32.gmra.mxu0 %v2801_v26  ;;  %590 = vmatmul.f32.gmra.mxu1 %v2801_v26  ;;  %v500_v19 = vld [vmem:[#allocation5 + $0x5e8] sm:$0xff]  ;;  %v487_v21 = vld [vmem:[#allocation5 + $0x580] sm:$0xff]  ;;  %v490_v22 = vld [vmem:[#allocation5 + $0x598] sm:$0xff] }
  0x68   : > { %655 = vmatmul.f32.gmra.mxu2 %v2801_v26  ;;  %720 = vmatmul.f32.gmra.mxu3 %v2801_v26  ;;  %v2885_v23 = vld [vmem:[%s2772_s11 + $0x70] sm:$0xff]  ;;  %v2892_v24 = vld [vmem:[%s2772_s11 + $0x78] sm:$0xff] }
  0x69   : > { %899 = vmatpush.msrb.mxu2 %v425_v27  ;;  %769 = vmatpush.msrb.mxu0 %v423_v28  ;;  %v1284_v28 = vlaneseq }
  0x6a   : > { %964 = vmatpush.msrb.mxu3 %v426_v29  ;;  %834 = vmatpush.msrb.mxu1 %v424_v30  ;;  %v488_v29 = vld [vmem:[#allocation5 + $0x588] sm:$0xff]  ;;  %v477_v30 = vld [vmem:[#allocation5 + $0x530] sm:$0xff] }
  0x6b   : > { %900 = vmatpush.msrb.mxu2 %v413_v32  ;;  %770 = vmatpush.msrb.mxu0 %v411_v33  ;;  %v475_v32 = vld [vmem:[#allocation5 + $0x520] sm:$0xff] }
  0x6c   : > { %965 = vmatpush.msrb.mxu3 %v414_v34  ;;  %835 = vmatpush.msrb.mxu1 %v412_v35  ;;  %v2904_v35 = vshrl.u32 %v1284_v28, 7 }
  0x6d   : > { %901 = vmatpush.msrb.mxu2 %v401_v37  ;;  %771 = vmatpush.msrb.mxu0 %v399_v38  ;;  %v478_v37 = vld [vmem:[#allocation5 + $0x538] sm:$0xff]  ;;  %v476_v38 = vld [vmem:[#allocation5 + $0x528] sm:$0xff] }
  0x6e   : > { %966 = vmatpush.msrb.mxu3 %v402_v39  ;;  %836 = vmatpush.msrb.mxu1 %v400_v40  ;;  %v465_v39 = vld [vmem:[#allocation5 + $0x4d0] sm:$0xff]  ;;  %vm1303_vm0 = vcmp.lt.s32.totalorder %v2904_v35, 7  ;;  %vm1352_vm1 = vcmp.lt.s32.totalorder %v2904_v35, 6  ;;  %vm1588_vm9 = vcmp.lt.s32.totalorder %v2904_v35, 5  ;;  %vm1872_vm12 = vcmp.lt.s32.totalorder %v2904_v35, 4 }
  0x6f   : > { %528 = vmatmul.f32.gmra.mxu0 %v2808_v31  ;;  %593 = vmatmul.f32.gmra.mxu1 %v2808_v31 }
  0x70   : > { %658 = vmatmul.f32.gmra.mxu2 %v2808_v31  ;;  %723 = vmatmul.f32.gmra.mxu3 %v2808_v31 }
  0x71   : > { %902 = vmatpush.msrb.mxu2 %v389_v42  ;;  %772 = vmatpush.msrb.mxu0 %v387_v43  ;;  %v463_v43 = vld [vmem:[#allocation5 + $0x4c0] sm:$0xff] }
  0x72   : > { %967 = vmatpush.msrb.mxu3 %v390_v44  ;;  %837 = vmatpush.msrb.mxu1 %v388_v45  ;;  %v466_v44 = vld [vmem:[#allocation5 + $0x4d8] sm:$0xff] }
  0x73   : > { %903 = vmatpush.msrb.mxu2 %v377_v47  ;;  %773 = vmatpush.msrb.mxu0 %v375_v48 }
  0x74   : > { %968 = vmatpush.msrb.mxu3 %v378_v49  ;;  %838 = vmatpush.msrb.mxu1 %v376_v50  ;;  %v2916_v49 = vadd.s32 8, %v2904_v35 }
  0x75   : > { %904 = vmatpush.msrb.mxu2 %v365_v52  ;;  %774 = vmatpush.msrb.mxu0 %v363_v53 }
  0x76   : > { %969 = vmatpush.msrb.mxu3 %v366_v54  ;;  %839 = vmatpush.msrb.mxu1 %v364_v55  ;;  %vm1386_vm2 = vcmp.lt.s32.totalorder %v2916_v49, 14  ;;  %vm1622_vm10 = vcmp.lt.s32.totalorder %v2916_v49, 13  ;;  %vm1906_vm13 = vcmp.lt.s32.totalorder %v2916_v49, 12 }
  0x77   : > { %531 = vmatmul.f32.gmra.mxu0 %v2815_v36  ;;  %596 = vmatmul.f32.gmra.mxu1 %v2815_v36 }
  0x78   : > { %661 = vmatmul.f32.gmra.mxu2 %v2815_v36  ;;  %726 = vmatmul.f32.gmra.mxu3 %v2815_v36 }
  0x79   : > { %905 = vmatpush.msrb.mxu2 %v353_v57  ;;  %775 = vmatpush.msrb.mxu0 %v351_v58 }
  0x7a   : > { %970 = vmatpush.msrb.mxu3 %v354_v59  ;;  %840 = vmatpush.msrb.mxu1 %v352_v60 }
  0x7b   : > { %906 = vmatpush.msrb.mxu2 %v341_v62  ;;  %776 = vmatpush.msrb.mxu0 %v339_v63 }
  0x7c   : > { %971 = vmatpush.msrb.mxu3 %v342_v1  ;;  %841 = vmatpush.msrb.mxu1 %v340_v2 }
  0x7d   : > { %907 = vmatpush.msrb.mxu2 %v329_v4  ;;  %777 = vmatpush.msrb.mxu0 %v327_v5 }
  0x7e   : > { %972 = vmatpush.msrb.mxu3 %v330_v6  ;;  %842 = vmatpush.msrb.mxu1 %v328_v7 }
  0x7f   : > { %534 = vmatmul.f32.gmra.mxu0 %v2822_v41  ;;  %599 = vmatmul.f32.gmra.mxu1 %v2822_v41 }
  0x80   : > { %664 = vmatmul.f32.gmra.mxu2 %v2822_v41  ;;  %729 = vmatmul.f32.gmra.mxu3 %v2822_v41 }
  0x81   : > { %908 = vmatpush.msrb.mxu2 %v317_v9  ;;  %778 = vmatpush.msrb.mxu0 %v315_v10  ;;  %v464_v9 = vld [vmem:[#allocation5 + $0x4c8] sm:$0xff]  ;;  %v453_v10 = vld [vmem:[#allocation5 + $0x470] sm:$0xff] }
  0x82   : > { %973 = vmatpush.msrb.mxu3 %v318_v11  ;;  %843 = vmatpush.msrb.mxu1 %v316_v12  ;;  %v451_v11 = vld [vmem:[#allocation5 + $0x460] sm:$0xff]  ;;  %v454_v12 = vld [vmem:[#allocation5 + $0x478] sm:$0xff] }
  0x83   : > { %1153 = vmatpush.msra.mxu2 %v501_v15  ;;  %1023 = vmatpush.msra.mxu0 %v499_v16  ;;  %v452_v16 = vld [vmem:[#allocation5 + $0x468] sm:$0xff] }
  0x84   : > { %1218 = vmatpush.msra.mxu3 %v502_v17  ;;  %1088 = vmatpush.msra.mxu1 %v500_v19  ;;  %v439_v17 = vld [vmem:[#allocation5 + $0x400] sm:$0xff]  ;;  %v442_v19 = vld [vmem:[#allocation5 + $0x418] sm:$0xff] }
  0x85   : > { %1154 = vmatpush.msra.mxu2 %v489_v20  ;;  %1024 = vmatpush.msra.mxu0 %v487_v21 }
  0x86   : > { %1219 = vmatpush.msra.mxu3 %v490_v22  ;;  %1089 = vmatpush.msra.mxu1 %v488_v29 }
  0x87   : > { %537 = vmatmul.f32.gmra.mxu0 %v2829_v46  ;;  %602 = vmatmul.f32.gmra.mxu1 %v2829_v46 }
  0x88   : > { %667 = vmatmul.f32.gmra.mxu2 %v2829_v46  ;;  %732 = vmatmul.f32.gmra.mxu3 %v2829_v46 }
  0x89   : > { %1155 = vmatpush.msra.mxu2 %v477_v30  ;;  %1025 = vmatpush.msra.mxu0 %v475_v32 }
  0x8a   : > { %1220 = vmatpush.msra.mxu3 %v478_v37  ;;  %1090 = vmatpush.msra.mxu1 %v476_v38 }
  0x8b   : > { %1156 = vmatpush.msra.mxu2 %v465_v39  ;;  %1026 = vmatpush.msra.mxu0 %v463_v43 }
  0x8c   : > { %1221 = vmatpush.msra.mxu3 %v466_v44  ;;  %1091 = vmatpush.msra.mxu1 %v464_v9 }
  0x8d   : > { %1157 = vmatpush.msra.mxu2 %v453_v10  ;;  %1027 = vmatpush.msra.mxu0 %v451_v11 }
  0x8e   : > { %1222 = vmatpush.msra.mxu3 %v454_v12  ;;  %1092 = vmatpush.msra.mxu1 %v452_v16 }
  0x8f   : > { %540 = vmatmul.f32.gmra.mxu0 %v2836_v51  ;;  %605 = vmatmul.f32.gmra.mxu1 %v2836_v51 }
  0x90   : > { %670 = vmatmul.f32.gmra.mxu2 %v2836_v51  ;;  %735 = vmatmul.f32.gmra.mxu3 %v2836_v51 }
  0x91   : > { %1028 = vmatpush.msra.mxu0 %v439_v17  ;;  %1223 = vmatpush.msra.mxu3 %v442_v19 }
  0x97   : > { %543 = vmatmul.f32.gmra.mxu0 %v2843_v56  ;;  %608 = vmatmul.f32.gmra.mxu1 %v2843_v56 }
  0x98   : > { %673 = vmatmul.f32.gmra.mxu2 %v2843_v56  ;;  %738 = vmatmul.f32.gmra.mxu3 %v2843_v56 }
  0x9f   : > { %546 = vmatmul.f32.gmra.mxu0 %v2850_v61  ;;  %611 = vmatmul.f32.gmra.mxu1 %v2850_v61 }
  0xa0   : > { %676 = vmatmul.f32.gmra.mxu2 %v2850_v61  ;;  %741 = vmatmul.f32.gmra.mxu3 %v2850_v61 }
  0xa7   : > { %549 = vmatmul.f32.gmra.mxu0 %v2857_v3  ;;  %614 = vmatmul.f32.gmra.mxu1 %v2857_v3 }
  0xa8   : > { %679 = vmatmul.f32.gmra.mxu2 %v2857_v3  ;;  %744 = vmatmul.f32.gmra.mxu3 %v2857_v3 }
  0xaf   : > { %552 = vmatmul.f32.gmra.mxu0 %v2864_v8  ;;  %617 = vmatmul.f32.gmra.mxu1 %v2864_v8 }
  0xb0   : > { %682 = vmatmul.f32.gmra.mxu2 %v2864_v8  ;;  %747 = vmatmul.f32.gmra.mxu3 %v2864_v8 }
  0xb7   : > { %555 = vmatmul.f32.gmra.mxu0 %v2871_v14  ;;  %620 = vmatmul.f32.gmra.mxu1 %v2871_v14 }
  0xb8   : > { %685 = vmatmul.f32.gmra.mxu2 %v2871_v14  ;;  %750 = vmatmul.f32.gmra.mxu3 %v2871_v14 }
  0xbf   : > { %558 = vmatmul.f32.gmra.mxu0 %v2878_v18  ;;  %623 = vmatmul.f32.gmra.mxu1 %v2878_v18 }
  0xc0   : > { %688 = vmatmul.f32.gmra.mxu2 %v2878_v18  ;;  %753 = vmatmul.f32.gmra.mxu3 %v2878_v18 }
  0xc7   : > { %561 = vmatmul.f32.gmra.mxu0 %v2885_v23  ;;  %626 = vmatmul.f32.gmra.mxu1 %v2885_v23 }
  0xc8   : > { %691 = vmatmul.f32.gmra.mxu2 %v2885_v23  ;;  %756 = vmatmul.f32.gmra.mxu3 %v2885_v23 }
  0xcf   : > { %564 = vmatmul.f32.gmra.mxu0 %v2892_v24  ;;  %629 = vmatmul.f32.gmra.mxu1 %v2892_v24 }
  0xd0   : > { %694 = vmatmul.f32.gmra.mxu2 %v2892_v24  ;;  %759 = vmatmul.f32.gmra.mxu3 %v2892_v24 }
  0xd4   : > { %v520_v25 = vpop.f32.mrf.mxu0  ;;  %v585_v27 = vpop.f32.mrf.mxu1 }
  0xd5   : > { %v1287_v45 = vrot.slane %v585_v27, 1 }
  0xd7   : > { %779 = vmatmul.f32.vlgmr.msrb.gmra.mxu0 %v2787_v0  ;;  %844 = vmatmul.f32.vlgmr.msrb.gmra.mxu1 %v2787_v0 }
  0xd8   : > { %909 = vmatmul.f32.vlgmr.msrb.gmra.mxu2 %v2787_v0  ;;  %974 = vmatmul.f32.vlgmr.msrb.gmra.mxu3 %v2787_v0 }
  0xdb   : > { %v650_v33 = vpop.f32.mrf.mxu2  ;;  %v2902_v34 = vpop.f32.mrf.mxu3 }
  0xdc   : > { %v523_v40 = vpop.f32.mrf.mxu0  ;;  %v588_v42 = vpop.f32.mrf.mxu1  ;;  %v1336_v53 = vrot.slane %v650_v33, 2 }
  0xdd   : > { %v1295_v0 = vrot.slane %v588_v42, 1 }
  0xdf   : > { %782 = vmatmul.f32.gmra.mxu0 %v2794_v13  ;;  %847 = vmatmul.f32.gmra.mxu1 %v2794_v13  ;;  %v1304_v47 = vsel %vm1303_vm0, %v1287_v45, %v1295_v0  ;;  %v1312_v48 = vsel %vm1303_vm0, %v1295_v0, %v1287_v45 }
  0xe0   : > { %912 = vmatmul.f32.gmra.mxu2 %v2794_v13  ;;  %977 = vmatmul.f32.gmra.mxu3 %v2794_v13  ;;  %v1320_v58 = vadd.f32 %v1304_v47, %v520_v25  ;;  %v1321_v13 = vadd.f32 %v1312_v48, %v523_v40 }
  0xe3   : > { %v653_v50 = vpop.f32.mrf.mxu2  ;;  %v2919_v52 = vpop.f32.mrf.mxu3 }
  0xe4   : > { %v1344_v54 = vrot.slane %v653_v50, 2  ;;  %v526_v55 = vpop.f32.mrf.mxu0  ;;  %v591_v57 = vpop.f32.mrf.mxu1 }
  0xe5   : > { %v1288_v21 = vrot.slane %v591_v57, 1  ;;  %v440_v57 = vld [vmem:[#allocation5 + $0x408] sm:$0xff] }
  0xe6   : > { %v1353_v59 = vsel %vm1352_vm1, %v1336_v53, %v1344_v54  ;;  %v1361_v60 = vsel %vm1352_vm1, %v1344_v54, %v1336_v53  ;;  %1093 = vmatpush.msra.mxu1 %v440_v57  ;;  %v403_v57 = vld [vmem:[#allocation5 + $0x2e0] sm:$0xff] }
  0xe7   : > { %v1369_v62 = vadd.f32 %v1353_v59, %v1320_v58  ;;  %v1370_v63 = vadd.f32 %v1361_v60, %v1321_v13  ;;  %785 = vmatmul.f32.gmra.mxu0 %v2801_v26  ;;  %850 = vmatmul.f32.gmra.mxu1 %v2801_v26  ;;  %v429_v58 = vld [vmem:[#allocation5 + $0x3b0] sm:$0xff]  ;;  %v427_v13 = vld [vmem:[#allocation5 + $0x3a0] sm:$0xff]  ;;  %v430_v59 = vld [vmem:[#allocation5 + $0x3b8] sm:$0xff] }
  0xe8   : > { %915 = vmatmul.f32.gmra.mxu2 %v2801_v26  ;;  %980 = vmatmul.f32.gmra.mxu3 %v2801_v26  ;;  %v441_v26 = vld [vmem:[#allocation5 + $0x410] sm:$0xff] }
  0xe9   : > { %v1388_v1 = vsel %vm1386_vm2, %v1370_v63, -inf  ;;  %1158 = vmatpush.msra.mxu2 %v441_v26  ;;  %1029 = vmatpush.msra.mxu0 %v427_v13  ;;  %v417_v63 = vld [vmem:[#allocation5 + $0x350] sm:$0xff] }
  0xea   : > { %v1403_v2 = vmax.f32 %v1369_v62, %v1388_v1  ;;  %1224 = vmatpush.msra.mxu3 %v430_v59  ;;  %v415_v1 = vld [vmem:[#allocation5 + $0x340] sm:$0xff]  ;;  %v404_v59 = vld [vmem:[#allocation5 + $0x2e8] sm:$0xff] }
  0xeb   : > { %v656_v4 = vpop.f32.mrf.mxu2  ;;  %v2932_v5 = vpop.f32.mrf.mxu3  ;;  %1159 = vmatpush.msra.mxu2 %v429_v58  ;;  %1030 = vmatpush.msra.mxu0 %v415_v1 }
  0xec   : > { %v529_v6 = vpop.f32.mrf.mxu0  ;;  %v594_v7 = vpop.f32.mrf.mxu1  ;;  %v1404_v20 = vrot.slane %v1403_v2, 4  ;;  %v1337_v30 = vrot.slane %v656_v4, 2  ;;  %v2958_v4 = vld [vmem:[#allocation7] sm:$0x7] }
  0xed   : > { %v1296_v15 = vrot.slane %v594_v7, 1  ;;  %1160 = vmatpush.msra.mxu2 %v417_v63  ;;  %1031 = vmatpush.msra.mxu0 %v403_v57  ;;  %v394_v63 = vld [vmem:[#allocation5 + $0x298] sm:$0xff] }
  0xee   : > { %v1405_v29 = vmax.f32 %v1403_v2, %v1404_v20  ;;  %v418_v2 = vld [vmem:[#allocation5 + $0x358] sm:$0xff] }
  0xef   : > { %788 = vmatmul.f32.gmra.mxu0 %v2808_v31  ;;  %853 = vmatmul.f32.gmra.mxu1 %v2808_v31  ;;  %v1305_v22 = vsel %vm1303_vm0, %v1288_v21, %v1296_v15  ;;  %v1313_v25 = vsel %vm1303_vm0, %v1296_v15, %v1288_v21  ;;  %v2967_v15 = vperm.slane %v2958_v4, 0 }
  0xf0   : > { %918 = vmatmul.f32.gmra.mxu2 %v2808_v31  ;;  %983 = vmatmul.f32.gmra.mxu3 %v2808_v31  ;;  %v1322_v38 = vadd.f32 %v1305_v22, %v526_v55  ;;  %v1323_v31 = vadd.f32 %v1313_v25, %v529_v6  ;;  %v1406_v44 = vrot.slane %v1405_v29, 2 }
  0xf1   : > { %1225 = vmatpush.msra.mxu3 %v418_v2 }
  0xf2   : > { %v1407_v50 = vmax.f32 %v1405_v29, %v1406_v44 }
  0xf3   : > { %v659_v27 = vpop.f32.mrf.mxu2  ;;  %v2942_v28 = vpop.f32.mrf.mxu3 }
  0xf4   : > { %v1345_v32 = vrot.slane %v659_v27, 2  ;;  %v532_v33 = vpop.f32.mrf.mxu0  ;;  %v597_v37 = vpop.f32.mrf.mxu1  ;;  %v1408_v6 = vrot.slane %v1407_v50, 1 }
  0xf5   : > { %v1289_v9 = vrot.slane %v597_v37, 1 }
  0xf6   : > { %v1354_v39 = vsel %vm1352_vm1, %v1337_v30, %v1345_v32  ;;  %v1362_v40 = vsel %vm1352_vm1, %v1345_v32, %v1337_v30  ;;  %v1409_v17 = vmax.f32 %v1407_v50, %v1408_v6 }
  0xf7   : > { %v1371_v42 = vadd.f32 %v1354_v39, %v1322_v38  ;;  %v1372_v43 = vadd.f32 %v1362_v40, %v1323_v31  ;;  %791 = vmatmul.f32.gmra.mxu0 %v2815_v36  ;;  %856 = vmatmul.f32.gmra.mxu1 %v2815_v36 }
  0xf8   : > { %921 = vmatmul.f32.gmra.mxu2 %v2815_v36  ;;  %986 = vmatmul.f32.gmra.mxu3 %v2815_v36  ;;  %v428_v36 = vld [vmem:[#allocation5 + $0x3a8] sm:$0xff]  ;;  %v1460_v31 = vadd.f32 %v2967_v15, %v1409_v17 }
  0xf9   : > { %v1390_v0 = vsel %vm1386_vm2, %v1372_v43, -inf  ;;  %1094 = vmatpush.msra.mxu1 %v428_v36  ;;  %v391_v36 = vld [vmem:[#allocation5 + $0x280] sm:$0xff] }
  0xfa   : > { %v1410_v45 = vmax.f32 %v1371_v42, %v1390_v0  ;;  %v1468_v0 = vmax.f32 %v1460_v31, 0.0  ;;  %1032 = vmatpush.msra.mxu0 %v391_v36 }
  0xfb   : > { %v662_v47 = vpop.f32.mrf.mxu2  ;;  %v2954_v48 = vpop.f32.mrf.mxu3 }
  0xfc   : > { %v1411_v53 = vrot.slane %v1410_v45, 4  ;;  %v535_v54 = vpop.f32.mrf.mxu0  ;;  %v600_v55 = vpop.f32.mrf.mxu1 }
  0xfd   : > { %v1297_v62 = vrot.slane %v600_v55, 1  ;;  %v405_v55 = vld [vmem:[#allocation5 + $0x2f0] sm:$0xff] }
  0xfe   : > { %v1412_v60 = vmax.f32 %v1410_v45, %v1411_v53  ;;  %1161 = vmatpush.msra.mxu2 %v405_v55 }
  0xff   : > { %794 = vmatmul.f32.gmra.mxu0 %v2822_v41  ;;  %859 = vmatmul.f32.gmra.mxu1 %v2822_v41  ;;  %v1306_v11 = vsel %vm1303_vm0, %v1289_v9, %v1297_v62  ;;  %v1314_v12 = vsel %vm1303_vm0, %v1297_v62, %v1289_v9 }
 0x100   : > { %v1413_v7 = vrot.slane %v1412_v60, 2  ;;  %924 = vmatmul.f32.gmra.mxu2 %v2822_v41  ;;  %989 = vmatmul.f32.gmra.mxu3 %v2822_v41  ;;  %v1338_v41 = vrot.slane %v662_v47, 2  ;;  %v1324_v25 = vadd.f32 %v1306_v11, %v532_v33  ;;  %v1325_v27 = vadd.f32 %v1314_v12, %v535_v54  ;;  %v416_v54 = vld [vmem:[#allocation5 + $0x348] sm:$0xff] }
 0x101   : > { %1095 = vmatpush.msra.mxu1 %v416_v54 }
 0x102   : > { %v1414_v10 = vmax.f32 %v1412_v60, %v1413_v7  ;;  %v393_v60 = vld [vmem:[#allocation5 + $0x290] sm:$0xff] }
 0x103   : > { %v665_v16 = vpop.f32.mrf.mxu2  ;;  %v2969_v26 = vpop.f32.mrf.mxu3  ;;  %1096 = vmatpush.msra.mxu1 %v404_v59  ;;  %1162 = vmatpush.msra.mxu2 %v393_v60 }
 0x104   : > { %v1415_v19 = vrot.slane %v1414_v10, 1  ;;  %v1346_v20 = vrot.slane %v665_v16, 2  ;;  %v538_v21 = vpop.f32.mrf.mxu0  ;;  %v603_v22 = vpop.f32.mrf.mxu1 }
 0x105   : > { %v1290_v2 = vrot.slane %v603_v22, 1 }
 0x106   : > { %v1416_v29 = vmax.f32 %v1414_v10, %v1415_v19  ;;  %v1355_v30 = vsel %vm1352_vm1, %v1338_v41, %v1346_v20  ;;  %v1363_v32 = vsel %vm1352_vm1, %v1346_v20, %v1338_v41 }
 0x107   : > { %v1373_v37 = vadd.f32 %v1355_v30, %v1324_v25  ;;  %v1374_v38 = vadd.f32 %v1363_v32, %v1325_v27  ;;  %797 = vmatmul.f32.gmra.mxu0 %v2829_v46  ;;  %862 = vmatmul.f32.gmra.mxu1 %v2829_v46 }
 0x108   : > { %v1461_v39 = vadd.f32 %v2967_v15, %v1416_v29  ;;  %927 = vmatmul.f32.gmra.mxu2 %v2829_v46  ;;  %992 = vmatmul.f32.gmra.mxu3 %v2829_v46  ;;  %v406_v46 = vld [vmem:[#allocation5 + $0x2f8] sm:$0xff] }
 0x109   : > { %v1392_v33 = vsel %vm1386_vm2, %v1374_v38, -inf  ;;  %1226 = vmatpush.msra.mxu3 %v406_v46  ;;  %v379_v38 = vld [vmem:[#allocation5 + $0x220] sm:$0xff] }
 0x10a   : > { %v1469_v40 = vmax.f32 %v1461_v39, 0.0  ;;  %v1417_v42 = vmax.f32 %v1373_v37, %v1392_v33  ;;  %v381_v37 = vld [vmem:[#allocation5 + $0x230] sm:$0xff]  ;;  %v382_v39 = vld [vmem:[#allocation5 + $0x238] sm:$0xff]  ;;  %v380_v33 = vld [vmem:[#allocation5 + $0x228] sm:$0xff]  ;;  %1033 = vmatpush.msra.mxu0 %v379_v38 }
 0x10b   : > { %v668_v43 = vpop.f32.mrf.mxu2  ;;  %v2983_v44 = vpop.f32.mrf.mxu3  ;;  %1227 = vmatpush.msra.mxu3 %v394_v63  ;;  %1163 = vmatpush.msra.mxu2 %v381_v37  ;;  %v343_v37 = vld [vmem:[#allocation5 + $0x100] sm:$0xff]  ;;  %v346_v38 = vld [vmem:[#allocation5 + $0x118] sm:$0xff] }
 0x10c   : > { %v2004_v45 = vrot.slane %v1469_v40, 7  ;;  %v1418_v47 = vrot.slane %v1417_v42, 4  ;;  %v541_v50 = vpop.f32.mrf.mxu0  ;;  %v606_v53 = vpop.f32.mrf.mxu1  ;;  %v1339_v16 = vrot.slane %v668_v43, 2  ;;  %v369_v40 = vld [vmem:[#allocation5 + $0x1d0] sm:$0xff] }
 0x10d   : > { %v1298_v13 = vrot.slane %v606_v53, 1  ;;  %1228 = vmatpush.msra.mxu3 %v382_v39  ;;  %1164 = vmatpush.msra.mxu2 %v369_v40 }
 0x10e   : > { %v1419_v58 = vmax.f32 %v1417_v42, %v1418_v47  ;;  %v2986_v62 = vsel %vm2005_vm3, %v2004_v45, %v1468_v0  ;;  %v367_v0 = vld [vmem:[#allocation5 + $0x1c0] sm:$0xff]  ;;  %v370_v45 = vld [vmem:[#allocation5 + $0x1d8] sm:$0xff] }
 0x10f   : > { %800 = vmatmul.f32.gmra.mxu0 %v2836_v51  ;;  %865 = vmatmul.f32.gmra.mxu1 %v2836_v51  ;;  %v1307_v7 = vsel %vm1303_vm0, %v1290_v2, %v1298_v13  ;;  %v1315_v9 = vsel %vm1303_vm0, %v1298_v13, %v1290_v2 }
 0x110   : > { %v1420_v1 = vrot.slane %v1419_v58, 2  ;;  %930 = vmatmul.f32.gmra.mxu2 %v2836_v51  ;;  %995 = vmatmul.f32.gmra.mxu3 %v2836_v51  ;;  %v1326_v51 = vadd.f32 %v1307_v7, %v538_v21  ;;  %v1327_v20 = vadd.f32 %v1315_v9, %v541_v50  ;;  %v392_v21 = vld [vmem:[#allocation5 + $0x288] sm:$0xff] }
 0x111   : > { %1097 = vmatpush.msra.mxu1 %v392_v21  ;;  %1034 = vmatpush.msra.mxu0 %v367_v0 }
 0x112   : > { %v1421_v6 = vmax.f32 %v1419_v58, %v1420_v1  ;;  %1229 = vmatpush.msra.mxu3 %v370_v45 }
 0x113   : > { %v671_v10 = vpop.f32.mrf.mxu2  ;;  %v2996_v11 = vpop.f32.mrf.mxu3  ;;  %1098 = vmatpush.msra.mxu1 %v380_v33 }
 0x114   : > { %v1422_v12 = vrot.slane %v1421_v6, 1  ;;  %v1347_v17 = vrot.slane %v671_v10, 2  ;;  %v544_v19 = vpop.f32.mrf.mxu0  ;;  %v609_v41 = vpop.f32.mrf.mxu1 }
 0x115   : > { %v1291_v59 = vrot.slane %v609_v41, 1 }
 0x116   : > { %v1423_v22 = vmax.f32 %v1421_v6, %v1422_v12  ;;  %v1356_v25 = vsel %vm1352_vm1, %v1339_v16, %v1347_v17  ;;  %v1364_v27 = vsel %vm1352_vm1, %v1347_v17, %v1339_v16 }
 0x117   : > { %v1375_v29 = vadd.f32 %v1356_v25, %v1326_v51  ;;  %v1376_v30 = vadd.f32 %v1364_v27, %v1327_v20  ;;  %803 = vmatmul.f32.gmra.mxu0 %v2843_v56  ;;  %868 = vmatmul.f32.gmra.mxu1 %v2843_v56  ;;  %v368_v51 = vld [vmem:[#allocation5 + $0x1c8] sm:$0xff]  ;;  %v357_v20 = vld [vmem:[#allocation5 + $0x170] sm:$0xff]  ;;  %v355_v27 = vld [vmem:[#allocation5 + $0x160] sm:$0xff] }
 0x118   : > { %v1462_v32 = vadd.f32 %v2967_v15, %v1423_v22  ;;  %933 = vmatmul.f32.gmra.mxu2 %v2843_v56  ;;  %998 = vmatmul.f32.gmra.mxu3 %v2843_v56 }
 0x119   : > { %v1394_v31 = vsel %vm1386_vm2, %v1376_v30, -inf  ;;  %v356_v30 = vld [vmem:[#allocation5 + $0x168] sm:$0xff]  ;;  %1099 = vmatpush.msra.mxu1 %v368_v51  ;;  %1165 = vmatpush.msra.mxu2 %v357_v20  ;;  %v321_v51 = vld [vmem:[#allocation5 + $0x50] sm:$0xff]  ;;  %v319_v20 = vld [vmem:[#allocation5 + $0x40] sm:$0xff] }
 0x11a   : > { %v1470_v42 = vmax.f32 %v1462_v32, 0.0  ;;  %v1424_v43 = vmax.f32 %v1375_v29, %v1394_v31  ;;  %v358_v29 = vld [vmem:[#allocation5 + $0x178] sm:$0xff]  ;;  %v345_v32 = vld [vmem:[#allocation5 + $0x110] sm:$0xff]  ;;  %1035 = vmatpush.msra.mxu0 %v355_v27  ;;  %v320_v27 = vld [vmem:[#allocation5 + $0x48] sm:$0xff] }
 0x11b   : > { %v674_v47 = vpop.f32.mrf.mxu2  ;;  %v3009_v50 = vpop.f32.mrf.mxu3  ;;  %1230 = vmatpush.msra.mxu3 %v358_v29  ;;  %1100 = vmatpush.msra.mxu1 %v356_v30 }
 0x11c   : > { %v2007_v56 = vrot.slane %v1470_v42, 6  ;;  %v1425_v53 = vrot.slane %v1424_v43, 4  ;;  %v547_v54 = vpop.f32.mrf.mxu0  ;;  %v612_v55 = vpop.f32.mrf.mxu1  ;;  %v1340_v6 = vrot.slane %v674_v47, 2  ;;  %1166 = vmatpush.msra.mxu2 %v345_v32  ;;  %1036 = vmatpush.msra.mxu0 %v343_v37 }
 0x11d   : > { %v1299_v46 = vrot.slane %v612_v55, 1  ;;  %1231 = vmatpush.msra.mxu3 %v346_v38 }
 0x11e   : > { %v1426_v57 = vmax.f32 %v1424_v43, %v1425_v53  ;;  %v2009_v58 = vsel %vm2008_vm4, %v2007_v56, %v2986_v62 }
 0x11f   : > { %806 = vmatmul.f32.gmra.mxu0 %v2850_v61  ;;  %871 = vmatmul.f32.gmra.mxu1 %v2850_v61  ;;  %v1308_v36 = vsel %vm1303_vm0, %v1291_v59, %v1299_v46  ;;  %v1316_v63 = vsel %vm1303_vm0, %v1299_v46, %v1291_v59 }
 0x120   : > { %v1427_v13 = vrot.slane %v1426_v57, 2  ;;  %936 = vmatmul.f32.gmra.mxu2 %v2850_v61  ;;  %1001 = vmatmul.f32.gmra.mxu3 %v2850_v61  ;;  %v1328_v12 = vadd.f32 %v1308_v36, %v544_v19  ;;  %v1329_v16 = vadd.f32 %v1316_v63, %v547_v54 }
 0x122   : > { %v1428_v60 = vmax.f32 %v1426_v57, %v1427_v13  ;;  %v344_v13 = vld [vmem:[#allocation5 + $0x108] sm:$0xff] }
 0x123   : > { %v677_v1 = vpop.f32.mrf.mxu2  ;;  %v3021_v2 = vpop.f32.mrf.mxu3  ;;  %1101 = vmatpush.msra.mxu1 %v344_v13 }
 0x124   : > { %v1429_v62 = vrot.slane %v1428_v60, 1  ;;  %v1348_v7 = vrot.slane %v677_v1, 2  ;;  %v3023_v9 = vpop.f32.mrf.mxu0  ;;  %v615_v10 = vpop.f32.mrf.mxu1 }
 0x125   : > { %v1292_v54 = vrot.slane %v615_v10, 1 }
 0x126   : > { %v1430_v17 = vmax.f32 %v1428_v60, %v1429_v62  ;;  %v1357_v61 = vsel %vm1352_vm1, %v1340_v6, %v1348_v7  ;;  %v1365_v41 = vsel %vm1352_vm1, %v1348_v7, %v1340_v6  ;;  %v333_v6 = vld [vmem:[#allocation5 + $0xb0] sm:$0xff]  ;;  %v331_v7 = vld [vmem:[#allocation5 + $0xa0] sm:$0xff] }
 0x127   : > { %v1377_v22 = vadd.f32 %v1357_v61, %v1328_v12  ;;  %v1378_v25 = vadd.f32 %v1365_v41, %v1329_v16  ;;  %809 = vmatmul.f32.gmra.mxu0 %v2857_v3  ;;  %874 = vmatmul.f32.gmra.mxu1 %v2857_v3  ;;  %v332_v16 = vld [vmem:[#allocation5 + $0xa8] sm:$0xff] }
 0x128   : > { %v1463_v19 = vadd.f32 %v2967_v15, %v1430_v17  ;;  %939 = vmatmul.f32.gmra.mxu2 %v2857_v3  ;;  %1004 = vmatmul.f32.gmra.mxu3 %v2857_v3 }
 0x129   : > { %v1396_v21 = vsel %vm1386_vm2, %v1378_v25, -inf  ;;  %1167 = vmatpush.msra.mxu2 %v333_v6  ;;  %1037 = vmatpush.msra.mxu0 %v331_v7 }
 0x12a   : > { %v1471_v31 = vmax.f32 %v1463_v19, 0.0  ;;  %v1431_v39 = vmax.f32 %v1377_v22, %v1396_v21  ;;  %1102 = vmatpush.msra.mxu1 %v332_v16 }
 0x12b   : > { %v680_v33 = vpop.f32.mrf.mxu2  ;;  %v3036_v40 = vpop.f32.mrf.mxu3  ;;  %1168 = vmatpush.msra.mxu2 %v321_v51  ;;  %1038 = vmatpush.msra.mxu0 %v319_v20 }
 0x12c   : > { %v2010_v3 = vrot.slane %v1471_v31, 5  ;;  %v1432_v42 = vrot.slane %v1431_v39, 4  ;;  %v553_v43 = vpop.f32.mrf.mxu0  ;;  %v618_v0 = vpop.f32.mrf.mxu1  ;;  %v1341_v36 = vrot.slane %v680_v33, 2  ;;  %1103 = vmatpush.msra.mxu1 %v320_v27 }
 0x12d   : > { %v1300_v47 = vrot.slane %v618_v0, 1 }
 0x12e   : > { %v1433_v45 = vmax.f32 %v1431_v39, %v1432_v42  ;;  %v2012_v56 = vsel %vm2011_vm5, %v2010_v3, %v2009_v58 }
 0x12f   : > { %812 = vmatmul.f32.gmra.mxu0 %v2864_v8  ;;  %877 = vmatmul.f32.gmra.mxu1 %v2864_v8  ;;  %v1309_v57 = vsel %vm1303_vm0, %v1292_v54, %v1300_v47  ;;  %v1317_v46 = vsel %vm1303_vm0, %v1300_v47, %v1292_v54 }
 0x130   : > { %v1434_v53 = vrot.slane %v1433_v45, 2  ;;  %942 = vmatmul.f32.gmra.mxu2 %v2864_v8  ;;  %1007 = vmatmul.f32.gmra.mxu3 %v2864_v8  ;;  %v334_v8 = vld [vmem:[#allocation5 + $0xb8] sm:$0xff]  ;;  %v1330_v10 = vadd.f32 %v1309_v57, %v3023_v9  ;;  %v1331_v12 = vadd.f32 %v1317_v46, %v553_v43 }
 0x131   : > { %1232 = vmatpush.msra.mxu3 %v334_v8  ;;  %v322_v9 = vld [vmem:[#allocation5 + $0x58] sm:$0xff] }
 0x132   : > { %v1435_v55 = vmax.f32 %v1433_v45, %v1434_v53 }
 0x133   : > { %v683_v59 = vpop.f32.mrf.mxu2  ;;  %v3047_v58 = vpop.f32.mrf.mxu3  ;;  %1233 = vmatpush.msra.mxu3 %v322_v9 }
 0x134   : > { %v1436_v60 = vrot.slane %v1435_v55, 1  ;;  %v1349_v63 = vrot.slane %v683_v59, 2  ;;  %v556_v1 = vpop.f32.mrf.mxu0  ;;  %v621_v62 = vpop.f32.mrf.mxu1 }
 0x135   : > { %v1293_v0 = vrot.slane %v621_v62, 1 }
 0x136   : > { %v1437_v17 = vmax.f32 %v1435_v55, %v1436_v60  ;;  %v1358_v61 = vsel %vm1352_vm1, %v1341_v36, %v1349_v63  ;;  %v1366_v41 = vsel %vm1352_vm1, %v1349_v63, %v1341_v36 }
 0x137   : > { %v1379_v22 = vadd.f32 %v1358_v61, %v1330_v10  ;;  %v1380_v25 = vadd.f32 %v1366_v41, %v1331_v12  ;;  %815 = vmatmul.f32.gmra.mxu0 %v2871_v14  ;;  %880 = vmatmul.f32.gmra.mxu1 %v2871_v14 }
 0x138   : > { %v1464_v29 = vadd.f32 %v2967_v15, %v1437_v17  ;;  %945 = vmatmul.f32.gmra.mxu2 %v2871_v14  ;;  %1010 = vmatmul.f32.gmra.mxu3 %v2871_v14 }
 0x139   : > { %v1398_v19 = vsel %vm1386_vm2, %v1380_v25, -inf }
 0x13a   : > { %v1438_v30 = vmax.f32 %v1379_v22, %v1398_v19  ;;  %v1472_v32 = vmax.f32 %v1464_v29, 0.0 }
 0x13b   : > { %v686_v21 = vpop.f32.mrf.mxu2  ;;  %v3061_v37 = vpop.f32.mrf.mxu3 }
 0x13c   : > { %v1439_v38 = vrot.slane %v1438_v30, 4  ;;  %v559_v31 = vpop.f32.mrf.mxu0  ;;  %v624_v39 = vpop.f32.mrf.mxu1  ;;  %v2013_v33 = vrot.slane %v1472_v32, 4  ;;  %v1342_v57 = vrot.slane %v686_v21, 2 }
 0x13d   : > { %v1301_v42 = vrot.slane %v624_v39, 1 }
 0x13e   : > { %v1440_v3 = vmax.f32 %v1438_v30, %v1439_v38  ;;  %v2015_v14 = vsel %vm2014_vm6, %v2013_v33, %v2012_v56 }
 0x13f   : > { %818 = vmatmul.f32.gmra.mxu0 %v2878_v18  ;;  %883 = vmatmul.f32.gmra.mxu1 %v2878_v18  ;;  %v1310_v47 = vsel %vm1303_vm0, %v1293_v0, %v1301_v42  ;;  %v1318_v53 = vsel %vm1303_vm0, %v1301_v42, %v1293_v0 }
 0x140   : > { %v1441_v43 = vrot.slane %v1440_v3, 2  ;;  %948 = vmatmul.f32.gmra.mxu2 %v2878_v18  ;;  %1013 = vmatmul.f32.gmra.mxu3 %v2878_v18  ;;  %v1332_v60 = vadd.f32 %v1310_v47, %v556_v1  ;;  %v1333_v36 = vadd.f32 %v1318_v53, %v559_v31  ;;  %v2404_v53 = vld [vmem:[%s2772_s11] sm:$0xff] }
 0x142   : > { %v1442_v45 = vmax.f32 %v1440_v3, %v1441_v43 }
 0x143   : > { %v689_v54 = vpop.f32.mrf.mxu2  ;;  %v3072_v55 = vpop.f32.mrf.mxu3 }
 0x144   : > { %v1443_v56 = vrot.slane %v1442_v45, 1  ;;  %v1350_v46 = vrot.slane %v689_v54, 2  ;;  %v562_v13 = vpop.f32.mrf.mxu0  ;;  %v627_v59 = vpop.f32.mrf.mxu1 }
 0x145   : > { %v1294_v27 = vrot.slane %v627_v59, 1 }
 0x146   : > { %v1444_v63 = vmax.f32 %v1442_v45, %v1443_v56  ;;  %v1359_v18 = vsel %vm1352_vm1, %v1342_v57, %v1350_v46  ;;  %v1367_v62 = vsel %vm1352_vm1, %v1350_v46, %v1342_v57 }
 0x147   : > { %v1381_v6 = vadd.f32 %v1359_v18, %v1332_v60  ;;  %v1382_v7 = vadd.f32 %v1367_v62, %v1333_v36  ;;  %821 = vmatmul.f32.gmra.mxu0 %v2885_v23  ;;  %886 = vmatmul.f32.gmra.mxu1 %v2885_v23 }
 0x148   : > { %951 = vmatmul.f32.gmra.mxu2 %v2885_v23  ;;  %1016 = vmatmul.f32.gmra.mxu3 %v2885_v23  ;;  %v1465_v1 = vadd.f32 %v2967_v15, %v1444_v63 }
 0x149   : > { %v1400_v8 = vsel %vm1386_vm2, %v1382_v7, -inf }
 0x14a   : > { %v1445_v10 = vmax.f32 %v1381_v6, %v1400_v8  ;;  %v1473_v12 = vmax.f32 %v1465_v1, 0.0 }
 0x14b   : > { %v692_v16 = vpop.f32.mrf.mxu2  ;;  %v3085_v17 = vpop.f32.mrf.mxu3 }
 0x14c   : > { %v1446_v61 = vrot.slane %v1445_v10, 4  ;;  %v565_v41 = vpop.f32.mrf.mxu0  ;;  %v630_v51 = vpop.f32.mrf.mxu1  ;;  %v2016_v20 = vrot.slane %v1473_v12, 3  ;;  %v1343_v31 = vrot.slane %v692_v16, 2  ;;  %v2405_v12 = vld [vmem:[%s2772_s11 + $0x8] sm:$0xff] }
 0x14d   : > { %v1302_v25 = vrot.slane %v630_v51, 1 }
 0x14e   : > { %v1447_v22 = vmax.f32 %v1445_v10, %v1446_v61  ;;  %v2018_v9 = vsel %vm2017_vm7, %v2016_v20, %v2015_v14 }
 0x14f   : > { %824 = vmatmul.f32.gmra.mxu0 %v2892_v24  ;;  %889 = vmatmul.f32.gmra.mxu1 %v2892_v24  ;;  %v1311_v19 = vsel %vm1303_vm0, %v1294_v27, %v1302_v25  ;;  %v1319_v30 = vsel %vm1303_vm0, %v1302_v25, %v1294_v27 }
 0x150   : > { %v1448_v23 = vrot.slane %v1447_v22, 2  ;;  %954 = vmatmul.f32.gmra.mxu2 %v2892_v24  ;;  %1019 = vmatmul.f32.gmra.mxu3 %v2892_v24  ;;  %v1334_v42 = vadd.f32 %v1311_v19, %v562_v13  ;;  %v1335_v14 = vadd.f32 %v1319_v30, %v565_v41 }
 0x152   : > { %v1449_v29 = vmax.f32 %v1447_v22, %v1448_v23 }
 0x153   : > { %v695_v32 = vpop.f32.mrf.mxu2  ;;  %v3096_v21 = vpop.f32.mrf.mxu3 }
 0x154   : > { %v1450_v38 = vrot.slane %v1449_v29, 1  ;;  %v1351_v39 = vrot.slane %v695_v32, 2  ;;  %v780_v33 = vpop.f32.mrf.mxu0  ;;  %v845_v3 = vpop.f32.mrf.mxu1 }
 0x155   : > { %v1476_v62 = vrot.slane %v780_v33, 1  ;;  %v1524_v22 = vrot.slane %v845_v3, 2 }
 0x156   : > { %v1451_v43 = vmax.f32 %v1449_v29, %v1450_v38  ;;  %v1360_v24 = vsel %vm1352_vm1, %v1343_v31, %v1351_v39  ;;  %v1368_v0 = vsel %vm1352_vm1, %v1351_v39, %v1343_v31 }
 0x157   : > { %v1383_v45 = vadd.f32 %v1360_v24, %v1334_v42  ;;  %v1384_v47 = vadd.f32 %v1368_v0, %v1335_v14  ;;  %1039 = vmatmul.f32.vlgmr.msra.gmra.mxu0 %v2404_v53  ;;  %1104 = vmatmul.f32.vlgmr.msra.gmra.mxu1 %v2404_v53  ;;  %v2406_v14 = vld [vmem:[%s2772_s11 + $0x10] sm:$0xff] }
 0x158   : > { %1169 = vmatmul.f32.vlgmr.msra.gmra.mxu2 %v2404_v53  ;;  %1234 = vmatmul.f32.vlgmr.msra.gmra.mxu3 %v2404_v53  ;;  %v1466_v54 = vadd.f32 %v2967_v15, %v1451_v43 }
 0x159   : > { %v1402_v56 = vsel %vm1386_vm2, %v1384_v47, -inf }
 0x15a   : > { %v1452_v57 = vmax.f32 %v1383_v45, %v1402_v56  ;;  %v1474_v46 = vmax.f32 %v1466_v54, 0.0 }
 0x15b   : > { %v910_v13 = vpop.f32.mrf.mxu2  ;;  %v3106_v59 = vpop.f32.mrf.mxu3 }
 0x15c   : > { %v1453_v60 = vrot.slane %v1452_v57, 4  ;;  %v783_v36 = vpop.f32.mrf.mxu0  ;;  %v848_v63 = vpop.f32.mrf.mxu1  ;;  %v2019_v18 = vrot.slane %v1474_v46, 2  ;;  %v1572_v25 = vrot.slane %v910_v13, 3 }
 0x15d   : > { %v1484_v6 = vrot.slane %v783_v36, 1  ;;  %v1532_v61 = vrot.slane %v848_v63, 2 }
 0x15e   : > { %v1454_v7 = vmax.f32 %v1452_v57, %v1453_v60  ;;  %v2021_v1 = vsel %vm2020_vm8, %v2019_v18, %v2018_v9  ;;  %v2407_v18 = vld [vmem:[%s2772_s11 + $0x18] sm:$0xff] }
 0x15f   : > { %v1492_v8 = vsel %vm1303_vm0, %v1476_v62, %v1484_v6  ;;  %v1500_v10 = vsel %vm1303_vm0, %v1484_v6, %v1476_v62  ;;  %1042 = vmatmul.f32.gmra.mxu0 %v2405_v12  ;;  %1107 = vmatmul.f32.gmra.mxu1 %v2405_v12  ;;  %v1540_v27 = vsel %vm1352_vm1, %v1524_v22, %v1532_v61 }
 0x160   : > { %v1455_v16 = vrot.slane %v1454_v7, 2  ;;  %1172 = vmatmul.f32.gmra.mxu2 %v2405_v12  ;;  %v1508_v41 = vadd.f32 %v1492_v8, %v2902_v34  ;;  %v1509_v51 = vadd.f32 %v1500_v10, %v2919_v52  ;;  %1237 = vmatmul.f32.gmra.mxu3 %v2405_v12  ;;  %v1548_v29 = vsel %vm1352_vm1, %v1532_v61, %v1524_v22 }
 0x162   : > { %v1456_v20 = vmax.f32 %v1454_v7, %v1455_v16  ;;  %v1556_v32 = vadd.f32 %v1540_v27, %v1508_v41  ;;  %v1557_v38 = vadd.f32 %v1548_v29, %v1509_v51 }
 0x163   : > { %v913_v9 = vpop.f32.mrf.mxu2  ;;  %v3117_v23 = vpop.f32.mrf.mxu3 }
 0x164   : > { %v1580_v19 = vrot.slane %v913_v9, 3  ;;  %v786_v34 = vpop.f32.mrf.mxu0  ;;  %v851_v30 = vpop.f32.mrf.mxu1  ;;  %v1457_v52 = vrot.slane %v1456_v20, 1 }
 0x165   : > { %v1477_v46 = vrot.slane %v786_v34, 1  ;;  %v1525_v8 = vrot.slane %v851_v30, 2  ;;  %v2408_v34 = vld [vmem:[%s2772_s11 + $0x20] sm:$0xff] }
 0x166   : > { %v1589_v31 = vsel %vm1588_vm9, %v1572_v25, %v1580_v19  ;;  %v1597_v39 = vsel %vm1588_vm9, %v1580_v19, %v1572_v25  ;;  %v1458_v33 = vmax.f32 %v1456_v20, %v1457_v52 }
 0x167   : > { %v1605_v3 = vadd.f32 %v1589_v31, %v1556_v32  ;;  %v1606_v42 = vadd.f32 %v1597_v39, %v1557_v38  ;;  %1045 = vmatmul.f32.gmra.mxu0 %v2406_v14  ;;  %1110 = vmatmul.f32.gmra.mxu1 %v2406_v14 }
 0x168   : > { %1175 = vmatmul.f32.gmra.mxu2 %v2406_v14  ;;  %v1467_v43 = vadd.f32 %v2967_v15, %v1458_v33  ;;  %1240 = vmatmul.f32.gmra.mxu3 %v2406_v14 }
 0x169   : > { %v1624_v24 = vsel %vm1622_vm10, %v1606_v42, -inf }
 0x16a   : > { %v1639_v0 = vmax.f32 %v1605_v3, %v1624_v24  ;;  %v1475_v45 = vmax.f32 %v1467_v43, 0.0 }
 0x16b   : > { %v916_v47 = vpop.f32.mrf.mxu2  ;;  %v3132_v53 = vpop.f32.mrf.mxu3 }
 0x16c   : > { %v789_v54 = vpop.f32.mrf.mxu0  ;;  %v854_v56 = vpop.f32.mrf.mxu1  ;;  %v2022_v57 = vrot.slane %v1475_v45, 1  ;;  %v1640_v15 = vrot.slane %v1639_v0, 4  ;;  %v1573_v16 = vrot.slane %v916_v47, 3  ;;  %v2409_v47 = vld [vmem:[%s2772_s11 + $0x28] sm:$0xff] }
 0x16d   : > { %v1485_v13 = vrot.slane %v789_v54, 1  ;;  %v1533_v62 = vrot.slane %v854_v56, 2 }
 0x16e   : > { %v3135_v60 = vsel %vm2023_vm11, %v2022_v57, %v2021_v1  ;;  %v1641_v1 = vmax.f32 %v1639_v0, %v1640_v15 }
 0x16f   : > { %v1493_v36 = vsel %vm1303_vm0, %v1477_v46, %v1485_v13  ;;  %v1501_v63 = vsel %vm1303_vm0, %v1485_v13, %v1477_v46  ;;  %1048 = vmatmul.f32.gmra.mxu0 %v2407_v18  ;;  %1113 = vmatmul.f32.gmra.mxu1 %v2407_v18  ;;  %v1541_v61 = vsel %vm1352_vm1, %v1525_v8, %v1533_v62 }
 0x170   : > { %1178 = vmatmul.f32.gmra.mxu2 %v2407_v18  ;;  %v1510_v6 = vadd.f32 %v1493_v36, %v2932_v5  ;;  %v1511_v7 = vadd.f32 %v1501_v63, %v2942_v28  ;;  %1243 = vmatmul.f32.gmra.mxu3 %v2407_v18  ;;  %v1549_v41 = vsel %vm1352_vm1, %v1533_v62, %v1525_v8  ;;  %v1642_v27 = vrot.slane %v1641_v1, 2 }
 0x171   : > { %v3167_v63 = vperm.slane %v2958_v4, 1 }
 0x172   : > { %v1558_v5 = vadd.f32 %v1541_v61, %v1510_v6  ;;  %v1559_v25 = vadd.f32 %v1549_v41, %v1511_v7  ;;  %v1643_v32 = vmax.f32 %v1641_v1, %v1642_v27 }
 0x173   : > { %v919_v10 = vpop.f32.mrf.mxu2  ;;  %v3144_v12 = vpop.f32.mrf.mxu3 }
 0x174   : > { %v1581_v51 = vrot.slane %v919_v10, 3  ;;  %v792_v20 = vpop.f32.mrf.mxu0  ;;  %v857_v22 = vpop.f32.mrf.mxu1  ;;  %v1644_v24 = vrot.slane %v1643_v32, 1 }
 0x175   : > { %v1478_v42 = vrot.slane %v792_v20, 1  ;;  %v1526_v15 = vrot.slane %v857_v22, 2 }
 0x176   : > { %v1590_v28 = vsel %vm1588_vm9, %v1573_v16, %v1581_v51  ;;  %v1598_v9 = vsel %vm1588_vm9, %v1581_v51, %v1573_v16  ;;  %v1645_v36 = vmax.f32 %v1643_v32, %v1644_v24 }
 0x177   : > { %v1607_v29 = vadd.f32 %v1590_v28, %v1558_v5  ;;  %v1608_v19 = vadd.f32 %v1598_v9, %v1559_v25  ;;  %1051 = vmatmul.f32.gmra.mxu0 %v2408_v34  ;;  %1116 = vmatmul.f32.gmra.mxu1 %v2408_v34  ;;  %v2410_v5 = vld [vmem:[%s2772_s11 + $0x30] sm:$0xff] }
 0x178   : > { %1181 = vmatmul.f32.gmra.mxu2 %v2408_v34  ;;  %1246 = vmatmul.f32.gmra.mxu3 %v2408_v34  ;;  %v1696_v25 = vadd.f32 %v3167_v63, %v1645_v36 }
 0x179   : > { %v1626_v30 = vsel %vm1622_vm10, %v1608_v19, -inf }
 0x17a   : > { %v1646_v52 = vmax.f32 %v1607_v29, %v1626_v30  ;;  %v1704_v30 = vmax.f32 %v1696_v25, 0.0 }
 0x17b   : > { %v922_v38 = vpop.f32.mrf.mxu2  ;;  %v3157_v31 = vpop.f32.mrf.mxu3 }
 0x17c   : > { %v1647_v39 = vrot.slane %v1646_v52, 4  ;;  %v795_v33 = vpop.f32.mrf.mxu0  ;;  %v860_v3 = vpop.f32.mrf.mxu1  ;;  %v1574_v18 = vrot.slane %v922_v38, 3 }
 0x17d   : > { %v1486_v14 = vrot.slane %v795_v33, 1  ;;  %v1534_v56 = vrot.slane %v860_v3, 2 }
 0x17e   : > { %v1648_v43 = vmax.f32 %v1646_v52, %v1647_v39 }
 0x17f   : > { %v1494_v0 = vsel %vm1303_vm0, %v1478_v42, %v1486_v14  ;;  %v1502_v45 = vsel %vm1303_vm0, %v1486_v14, %v1478_v42  ;;  %1054 = vmatmul.f32.gmra.mxu0 %v2409_v47  ;;  %1119 = vmatmul.f32.gmra.mxu1 %v2409_v47  ;;  %v1542_v8 = vsel %vm1352_vm1, %v1526_v15, %v1534_v56 }
 0x180   : > { %v1649_v54 = vrot.slane %v1648_v43, 2  ;;  %1184 = vmatmul.f32.gmra.mxu2 %v2409_v47  ;;  %v1512_v57 = vadd.f32 %v1494_v0, %v2954_v48  ;;  %v1513_v46 = vadd.f32 %v1502_v45, %v2969_v26  ;;  %1249 = vmatmul.f32.gmra.mxu3 %v2409_v47  ;;  %v1550_v48 = vsel %vm1352_vm1, %v1534_v56, %v1526_v15  ;;  %v2411_v47 = vld [vmem:[%s2772_s11 + $0x38] sm:$0xff] }
 0x182   : > { %v1650_v13 = vmax.f32 %v1648_v43, %v1649_v54  ;;  %v1560_v16 = vadd.f32 %v1542_v8, %v1512_v57  ;;  %v1561_v61 = vadd.f32 %v1550_v48, %v1513_v46 }
 0x183   : > { %v925_v62 = vpop.f32.mrf.mxu2  ;;  %v3169_v6 = vpop.f32.mrf.mxu3 }
 0x184   : > { %v1651_v7 = vrot.slane %v1650_v13, 1  ;;  %v1582_v26 = vrot.slane %v925_v62, 3  ;;  %v798_v1 = vpop.f32.mrf.mxu0  ;;  %v863_v10 = vpop.f32.mrf.mxu1 }
 0x185   : > { %v1479_v33 = vrot.slane %v798_v1, 1  ;;  %v1527_v24 = vrot.slane %v863_v10, 2 }
 0x186   : > { %v1652_v41 = vmax.f32 %v1650_v13, %v1651_v7  ;;  %v1591_v4 = vsel %vm1588_vm9, %v1574_v18, %v1582_v26  ;;  %v1599_v51 = vsel %vm1588_vm9, %v1582_v26, %v1574_v18 }
 0x187   : > { %v1609_v20 = vadd.f32 %v1591_v4, %v1560_v16  ;;  %v1610_v22 = vadd.f32 %v1599_v51, %v1561_v61  ;;  %1057 = vmatmul.f32.gmra.mxu0 %v2410_v5  ;;  %1122 = vmatmul.f32.gmra.mxu1 %v2410_v5  ;;  %v2412_v4 = vld [vmem:[%s2772_s11 + $0x40] sm:$0xff] }
 0x188   : > { %v1697_v28 = vadd.f32 %v3167_v63, %v1652_v41  ;;  %1187 = vmatmul.f32.gmra.mxu2 %v2410_v5  ;;  %1252 = vmatmul.f32.gmra.mxu3 %v2410_v5 }
 0x189   : > { %v1628_v9 = vsel %vm1622_vm10, %v1610_v22, -inf  ;;  %v2087_v22 = vld [vmem:[#allocation8 + $0x78] sm:$0xff] }
 0x18a   : > { %v1705_v27 = vmax.f32 %v1697_v28, 0.0  ;;  %v1653_v29 = vmax.f32 %v1609_v20, %v1628_v9  ;;  %2124 = vmatpush.msrb.mxu0 %v2087_v22  ;;  %v2077_v22 = vld [vmem:[#allocation8 + $0x28] sm:$0xff] }
 0x18b   : > { %v928_v19 = vpop.f32.mrf.mxu2  ;;  %v3184_v34 = vpop.f32.mrf.mxu3 }
 0x18c   : > { %v2034_v52 = vrot.slane %v1705_v27, 7  ;;  %v1654_v32 = vrot.slane %v1653_v29, 4  ;;  %v801_v38 = vpop.f32.mrf.mxu0  ;;  %v866_v39 = vpop.f32.mrf.mxu1  ;;  %v2086_v27 = vld [vmem:[#allocation8 + $0x70] sm:$0xff] }
 0x18d   : > { %v1487_v3 = vrot.slane %v801_v38, 1  ;;  %v1535_v42 = vrot.slane %v866_v39, 2  ;;  %2125 = vmatpush.msrb.mxu0 %v2086_v27 }
 0x18e   : > { %v1655_v14 = vmax.f32 %v1653_v29, %v1654_v32  ;;  %v2035_v43 = vsel %vm2005_vm3, %v2034_v52, %v1704_v30  ;;  %v2085_v32 = vld [vmem:[#allocation8 + $0x68] sm:$0xff] }
 0x18f   : > { %v1495_v0 = vsel %vm1303_vm0, %v1479_v33, %v1487_v3  ;;  %v1503_v45 = vsel %vm1303_vm0, %v1487_v3, %v1479_v33  ;;  %1060 = vmatmul.f32.gmra.mxu0 %v2411_v47  ;;  %1125 = vmatmul.f32.gmra.mxu1 %v2411_v47  ;;  %v1543_v46 = vsel %vm1352_vm1, %v1527_v24, %v1535_v42  ;;  %v2413_v33 = vld [vmem:[%s2772_s11 + $0x48] sm:$0xff] }
 0x190   : > { %v1656_v54 = vrot.slane %v1655_v14, 2  ;;  %v1514_v56 = vadd.f32 %v1495_v0, %v2983_v44  ;;  %v1515_v57 = vadd.f32 %v1503_v45, %v2996_v11  ;;  %1190 = vmatmul.f32.gmra.mxu2 %v2411_v47  ;;  %v1551_v13 = vsel %vm1352_vm1, %v1535_v42, %v1527_v24  ;;  %1255 = vmatmul.f32.gmra.mxu3 %v2411_v47  ;;  %v2084_v3 = vld [vmem:[#allocation8 + $0x60] sm:$0xff]  ;;  %v2082_v47 = vld [vmem:[#allocation8 + $0x50] sm:$0xff] }
 0x191   : > { %v1575_v44 = vrot.slane %v928_v19, 3  ;;  %2126 = vmatpush.msrb.mxu0 %v2085_v32 }
 0x192   : > { %v1657_v15 = vmax.f32 %v1655_v14, %v1656_v54  ;;  %v1562_v36 = vadd.f32 %v1543_v46, %v1514_v56  ;;  %v1563_v18 = vadd.f32 %v1551_v13, %v1515_v57  ;;  %v2083_v14 = vld [vmem:[#allocation8 + $0x58] sm:$0xff]  ;;  %v2081_v46 = vld [vmem:[#allocation8 + $0x48] sm:$0xff] }
 0x193   : > { %v931_v62 = vpop.f32.mrf.mxu2  ;;  %v3198_v7 = vpop.f32.mrf.mxu3  ;;  %2127 = vmatpush.msrb.mxu0 %v2084_v3  ;;  %v2414_v13 = vld [vmem:[%s2772_s11 + $0x50] sm:$0xff] }
 0x194   : > { %v1658_v8 = vrot.slane %v1657_v15, 1  ;;  %v1583_v48 = vrot.slane %v931_v62, 3  ;;  %v3200_v11 = vpop.f32.mrf.mxu0  ;;  %v3202_v26 = vpop.f32.mrf.mxu1  ;;  %v2079_v62 = vld [vmem:[#allocation8 + $0x38] sm:$0xff] }
 0x195   : > { %2128 = vmatpush.msrb.mxu0 %v2083_v14  ;;  %v2101_v14 = vld [vmem:[#allocation8 + $0xe8] sm:$0xff] }
 0x196   : > { %v1659_v1 = vmax.f32 %v1657_v15, %v1658_v8  ;;  %v1592_v10 = vsel %vm1588_vm9, %v1575_v44, %v1583_v48  ;;  %v1600_v16 = vsel %vm1588_vm9, %v1583_v48, %v1575_v44 }
 0x197   : > { %v1611_v61 = vadd.f32 %v1592_v10, %v1562_v36  ;;  %v1612_v41 = vadd.f32 %v1600_v16, %v1563_v18  ;;  %1063 = vmatmul.f32.gmra.mxu0 %v2412_v4  ;;  %1128 = vmatmul.f32.gmra.mxu1 %v2412_v4  ;;  %v2080_v36 = vld [vmem:[#allocation8 + $0x40] sm:$0xff] }
 0x198   : > { %v1698_v51 = vadd.f32 %v3167_v63, %v1659_v1  ;;  %1193 = vmatmul.f32.gmra.mxu2 %v2412_v4  ;;  %1258 = vmatmul.f32.gmra.mxu3 %v2412_v4  ;;  %v1480_v4 = vrot.slane %v3200_v11, 1 }
 0x199   : > { %v1630_v20 = vsel %vm1622_vm10, %v1612_v41, -inf  ;;  %2129 = vmatpush.msrb.mxu0 %v2082_v47 }
 0x19a   : > { %v1706_v5 = vmax.f32 %v1698_v51, 0.0  ;;  %v1660_v25 = vmax.f32 %v1611_v61, %v1630_v20  ;;  %v2078_v61 = vld [vmem:[#allocation8 + $0x30] sm:$0xff] }
 0x19b   : > { %v3212_v28 = vpop.f32.mrf.mxu2  ;;  %v3214_v9 = vpop.f32.mrf.mxu3  ;;  %2130 = vmatpush.msrb.mxu0 %v2081_v46  ;;  %v2415_v20 = vld [vmem:[%s2772_s11 + $0x58] sm:$0xff] }
 0x19c   : > { %v2036_v29 = vrot.slane %v1706_v5, 6  ;;  %v1661_v19 = vrot.slane %v1660_v25, 4  ;;  %v3216_v30 = vpop.f32.mrf.mxu0  ;;  %v3218_v52 = vpop.f32.mrf.mxu1  ;;  %v2103_v5 = vld [vmem:[#allocation8 + $0xf8] sm:$0xff] }
 0x19d   : > { %2131 = vmatpush.msrb.mxu0 %v2080_v36  ;;  %v1488_v16 = vrot.slane %v3216_v30, 1  ;;  %2144 = vmatpush.msrb.mxu1 %v2103_v5  ;;  %v1536_v30 = vrot.slane %v3218_v52, 2  ;;  %v2100_v36 = vld [vmem:[#allocation8 + $0xe0] sm:$0xff] }
 0x19e   : > { %v1662_v38 = vmax.f32 %v1660_v25, %v1661_v19  ;;  %v2037_v39 = vsel %vm2008_vm4, %v2036_v29, %v2035_v43  ;;  %v2076_v29 = vld [vmem:[#allocation8 + $0x20] sm:$0xff]  ;;  %v2102_v19 = vld [vmem:[#allocation8 + $0xf0] sm:$0xff] }
 0x19f   : > { %1066 = vmatmul.f32.gmra.mxu0 %v2413_v33  ;;  %1131 = vmatmul.f32.gmra.mxu1 %v2413_v33  ;;  %v1504_v25 = vsel %vm1303_vm0, %v1488_v16, %v1480_v4  ;;  %v1496_v52 = vsel %vm1303_vm0, %v1480_v4, %v1488_v16 }
 0x1a0   : > { %v1663_v42 = vrot.slane %v1662_v38, 2  ;;  %1196 = vmatmul.f32.gmra.mxu2 %v2413_v33  ;;  %1261 = vmatmul.f32.gmra.mxu3 %v2413_v33 }
 0x1a1   : > { %2132 = vmatpush.msrb.mxu0 %v2079_v62  ;;  %2145 = vmatpush.msrb.mxu1 %v2102_v19 }
 0x1a2   : > { %v1664_v24 = vmax.f32 %v1662_v38, %v1663_v42 }
 0x1a3   : > { %v3222_v0 = vpop.f32.mrf.mxu2  ;;  %v3224_v45 = vpop.f32.mrf.mxu3  ;;  %2133 = vmatpush.msrb.mxu0 %v2078_v61  ;;  %2146 = vmatpush.msrb.mxu1 %v2101_v14 }
 0x1a4   : > { %v1665_v54 = vrot.slane %v1664_v24, 1  ;;  %v810_v56 = vpop.f32.mrf.mxu0  ;;  %v3226_v43 = vpop.f32.mrf.mxu1  ;;  %v1584_v33 = vrot.slane %v3222_v0, 3 }
 0x1a5   : > { %v1481_v27 = vrot.slane %v810_v56, 1  ;;  %2134 = vmatpush.msrb.mxu0 %v2077_v22  ;;  %v1576_v56 = vrot.slane %v3212_v28, 3  ;;  %2147 = vmatpush.msrb.mxu1 %v2100_v36 }
 0x1a6   : > { %v1666_v57 = vmax.f32 %v1664_v24, %v1665_v54  ;;  %v1528_v24 = vrot.slane %v3202_v26, 2  ;;  %v1529_v26 = vrot.slane %v3226_v43, 2 }
 0x1a7   : > { %1069 = vmatmul.f32.gmra.mxu0 %v2414_v13  ;;  %1134 = vmatmul.f32.gmra.mxu1 %v2414_v13  ;;  %v1601_v62 = vsel %vm1588_vm9, %v1584_v33, %v1576_v56  ;;  %v1593_v61 = vsel %vm1588_vm9, %v1576_v56, %v1584_v33  ;;  %v2072_v33 = vld [vmem:[#allocation8] sm:$0xff]  ;;  %v2097_v56 = vld [vmem:[#allocation8 + $0xc8] sm:$0xff] }
 0x1a8   : > { %v1699_v15 = vadd.f32 %v3167_v63, %v1666_v57  ;;  %1199 = vmatmul.f32.gmra.mxu2 %v2414_v13  ;;  %1264 = vmatmul.f32.gmra.mxu3 %v2414_v13  ;;  %v2075_v57 = vld [vmem:[#allocation8 + $0x18] sm:$0xff]  ;;  %v1552_v46 = vsel %vm1352_vm1, %v1536_v30, %v1528_v24  ;;  %v1544_v16 = vsel %vm1352_vm1, %v1528_v24, %v1536_v30 }
 0x1a9   : > { %2135 = vmatpush.msrb.mxu0 %v2076_v29 }
 0x1aa   : > { %v1707_v18 = vmax.f32 %v1699_v15, 0.0  ;;  %v2416_v15 = vld [vmem:[%s2772_s11 + $0x60] sm:$0xff] }
 0x1ab   : > { %v3230_v8 = vpop.f32.mrf.mxu2  ;;  %v3232_v44 = vpop.f32.mrf.mxu3  ;;  %2136 = vmatpush.msrb.mxu0 %v2075_v57 }
 0x1ac   : > { %v2038_v48 = vrot.slane %v1707_v18, 5  ;;  %v813_v1 = vpop.f32.mrf.mxu0  ;;  %v3234_v10 = vpop.f32.mrf.mxu1  ;;  %v1577_v13 = vrot.slane %v3230_v8, 3  ;;  %v1516_v18 = vadd.f32 %v1496_v52, %v3009_v50  ;;  %v2099_v8 = vld [vmem:[#allocation8 + $0xd8] sm:$0xff]  ;;  %v2073_v50 = vld [vmem:[#allocation8 + $0x8] sm:$0xff] }
 0x1ad   : > { %v1489_v51 = vrot.slane %v813_v1, 1  ;;  %v1537_v47 = vrot.slane %v3234_v10, 2  ;;  %2148 = vmatpush.msrb.mxu1 %v2099_v8 }
 0x1ae   : > { %v3238_v41 = vsel %vm2011_vm5, %v2038_v48, %v2037_v39  ;;  %v1517_v39 = vadd.f32 %v1504_v25, %v3021_v2  ;;  %v1564_v22 = vadd.f32 %v1544_v16, %v1516_v18  ;;  %v2094_v16 = vld [vmem:[#allocation8 + $0xb0] sm:$0xff] }
 0x1af   : > { %1072 = vmatmul.f32.gmra.mxu0 %v2415_v20  ;;  %1137 = vmatmul.f32.gmra.mxu1 %v2415_v20  ;;  %v1505_v11 = vsel %vm1303_vm0, %v1489_v51, %v1481_v27  ;;  %v1497_v2 = vsel %vm1303_vm0, %v1481_v27, %v1489_v51  ;;  %v1553_v1 = vsel %vm1352_vm1, %v1537_v47, %v1529_v26 }
 0x1b0   : > { %1202 = vmatmul.f32.gmra.mxu2 %v2415_v20  ;;  %1267 = vmatmul.f32.gmra.mxu3 %v2415_v20  ;;  %v1519_v0 = vadd.f32 %v1505_v11, %v3047_v58  ;;  %v1565_v28 = vadd.f32 %v1552_v46, %v1517_v39  ;;  %v2074_v58 = vld [vmem:[#allocation8 + $0x10] sm:$0xff]  ;;  %v1518_v48 = vadd.f32 %v1497_v2, %v3036_v40  ;;  %v2096_v46 = vld [vmem:[#allocation8 + $0xc0] sm:$0xff] }
 0x1b1   : > { %2137 = vmatpush.msrb.mxu0 %v2074_v58  ;;  %v2098_v20 = vld [vmem:[#allocation8 + $0xd0] sm:$0xff]  ;;  %v1545_v5 = vsel %vm1352_vm1, %v1529_v26, %v1537_v47  ;;  %v1613_v39 = vadd.f32 %v1593_v61, %v1564_v22  ;;  %v2093_v22 = vld [vmem:[#allocation8 + $0xa8] sm:$0xff] }
 0x1b2   : > { %v1567_v10 = vadd.f32 %v1553_v1, %v1519_v0  ;;  %v1614_v4 = vadd.f32 %v1601_v62, %v1565_v28  ;;  %v1566_v30 = vadd.f32 %v1545_v5, %v1518_v48  ;;  %2149 = vmatpush.msrb.mxu1 %v2098_v20  ;;  %v2095_v28 = vld [vmem:[#allocation8 + $0xb8] sm:$0xff]  ;;  %v2418_v20 = vld [vmem:[%s2772_s11 + $0x70] sm:$0xff] }
 0x1b3   : > { %v943_v32 = vpop.f32.mrf.mxu2  ;;  %v3247_v38 = vpop.f32.mrf.mxu3  ;;  %2138 = vmatpush.msrb.mxu0 %v2073_v50 }
 0x1b4   : > { %v816_v3 = vpop.f32.mrf.mxu0  ;;  %v3251_v42 = vpop.f32.mrf.mxu1  ;;  %v1585_v54 = vrot.slane %v943_v32, 3  ;;  %v1632_v14 = vsel %vm1622_vm10, %v1614_v4, -inf  ;;  %2150 = vmatpush.msrb.mxu1 %v2097_v56 }
 0x1b5   : > { %v1482_v11 = vrot.slane %v816_v3, 1  ;;  %2139 = vmatpush.msrb.mxu0 %v2072_v33  ;;  %v1667_v26 = vmax.f32 %v1613_v39, %v1632_v14 }
 0x1b6   : > { %v1602_v43 = vsel %vm1588_vm9, %v1585_v54, %v1577_v13  ;;  %v1594_v25 = vsel %vm1588_vm9, %v1577_v13, %v1585_v54  ;;  %v2417_v54 = vld [vmem:[%s2772_s11 + $0x68] sm:$0xff]  ;;  %v1530_v13 = vrot.slane %v3251_v42, 2  ;;  %2151 = vmatpush.msrb.mxu1 %v2096_v46  ;;  %v2090_v46 = vld [vmem:[#allocation8 + $0x90] sm:$0xff] }
 0x1b7   : > { %1075 = vmatmul.f32.gmra.mxu0 %v2416_v15  ;;  %1140 = vmatmul.f32.gmra.mxu1 %v2416_v15  ;;  %v1616_v27 = vadd.f32 %v1602_v43, %v1567_v10  ;;  %v1615_v24 = vadd.f32 %v1594_v25, %v1566_v30  ;;  %v1668_v8 = vrot.slane %v1667_v26, 4 }
 0x1b8   : > { %1205 = vmatmul.f32.gmra.mxu2 %v2416_v15  ;;  %1270 = vmatmul.f32.gmra.mxu3 %v2416_v15 }
 0x1b9   : > { %v1634_v3 = vsel %vm1622_vm10, %v1616_v27, -inf  ;;  %2152 = vmatpush.msrb.mxu1 %v2095_v28  ;;  %v1669_v25 = vmax.f32 %v1667_v26, %v1668_v8 }
 0x1ba   : > { %v1674_v15 = vmax.f32 %v1615_v24, %v1634_v3 }
 0x1bb   : > { %v946_v40 = vpop.f32.mrf.mxu2  ;;  %v3278_v51 = vpop.f32.mrf.mxu3  ;;  %2153 = vmatpush.msrb.mxu1 %v2094_v16 }
 0x1bc   : > { %v819_v29 = vpop.f32.mrf.mxu0  ;;  %v884_v19 = vpop.f32.mrf.mxu1  ;;  %v1578_v62 = vrot.slane %v946_v40, 3  ;;  %v1675_v61 = vrot.slane %v1674_v15, 4 }
 0x1bd   : > { %v1490_v32 = vrot.slane %v819_v29, 1  ;;  %v1538_v2 = vrot.slane %v884_v19, 2  ;;  %v2092_v29 = vld [vmem:[#allocation8 + $0xa0] sm:$0xff]  ;;  %2154 = vmatpush.msrb.mxu1 %v2093_v22 }
 0x1be   : > { %v1676_v19 = vmax.f32 %v1674_v15, %v1675_v61 }
 0x1bf   : > { %v1498_v52 = vsel %vm1303_vm0, %v1482_v11, %v1490_v32  ;;  %v1506_v47 = vsel %vm1303_vm0, %v1490_v32, %v1482_v11  ;;  %1078 = vmatmul.f32.gmra.mxu0 %v2417_v54  ;;  %1143 = vmatmul.f32.gmra.mxu1 %v2417_v54  ;;  %v1546_v58 = vsel %vm1352_vm1, %v1530_v13, %v1538_v2 }
 0x1c0   : > { %1208 = vmatmul.f32.gmra.mxu2 %v2417_v54  ;;  %v1520_v0 = vadd.f32 %v1498_v52, %v3061_v37  ;;  %v1521_v57 = vadd.f32 %v1506_v47, %v3072_v55  ;;  %1273 = vmatmul.f32.gmra.mxu3 %v2417_v54  ;;  %v1554_v37 = vsel %vm1352_vm1, %v1538_v2, %v1530_v13  ;;  %v1670_v52 = vrot.slane %v1669_v25, 2  ;;  %v2091_v54 = vld [vmem:[#allocation8 + $0x98] sm:$0xff] }
 0x1c1   : > { %2155 = vmatpush.msrb.mxu1 %v2092_v29  ;;  %v1677_v56 = vrot.slane %v1676_v19, 2 }
 0x1c2   : > { %v1568_v43 = vadd.f32 %v1546_v58, %v1520_v0  ;;  %v1569_v42 = vadd.f32 %v1554_v37, %v1521_v57  ;;  %v2419_v0 = vld [vmem:[%s2772_s11 + $0x78] sm:$0xff]  ;;  %s2561_s11 = scalar_lea.hbm %s3581_s5, 32 }
 0x1c3   : > { %v949_v36 = vpop.f32.mrf.mxu2  ;;  %v3296_v18 = vpop.f32.mrf.mxu3  ;;  %2156 = vmatpush.msrb.mxu1 %v2091_v54  ;;  %v1678_v58 = vmax.f32 %v1676_v19, %v1677_v56  ;;  %p2563_p2 = scmp.lt.s32.totalorder %s2561_s11, %s2557_s7 }
 0x1c4   : > { %v1586_v55 = vrot.slane %v949_v36, 3  ;;  %v822_v48 = vpop.f32.mrf.mxu0  ;;  %v887_v1 = vpop.f32.mrf.mxu1  ;;  %v1671_v36 = vmax.f32 %v1669_v25, %v1670_v52 }
 0x1c5   : > { %v1483_v14 = vrot.slane %v822_v48, 1  ;;  %v1531_v28 = vrot.slane %v887_v1, 2  ;;  %2157 = vmatpush.msrb.mxu1 %v2090_v46  ;;  %p2564_p9 = por %p2563_p2, %p2562_p7 }
 0x1c6   : > { %v1595_v10 = vsel %vm1588_vm9, %v1578_v62, %v1586_v55  ;;  %v1603_v50 = vsel %vm1588_vm9, %v1586_v55, %v1578_v62  ;;  %v2089_v62 = vld [vmem:[#allocation8 + $0x88] sm:$0xff]  ;;  %v1672_v61 = vrot.slane %v1671_v36, 1 }
 0x1c7   : > { %v1617_v4 = vadd.f32 %v1595_v10, %v1568_v43  ;;  %v1618_v40 = vadd.f32 %v1603_v50, %v1569_v42  ;;  %1081 = vmatmul.f32.gmra.mxu0 %v2418_v20  ;;  %1146 = vmatmul.f32.gmra.mxu1 %v2418_v20  ;;  %v2088_v10 = vld [vmem:[#allocation8 + $0x80] sm:$0xff]  ;;  %p2565_p10 = pnand %p2564_p9, %p2560_p8 }
 0x1c8   : > { %1211 = vmatmul.f32.gmra.mxu2 %v2418_v20  ;;  %1276 = vmatmul.f32.gmra.mxu3 %v2418_v20  ;;  %v1679_v20 = vrot.slane %v1678_v58, 1  ;;  %v1673_v29 = vmax.f32 %v1671_v36, %v1672_v61 }
 0x1c9   : > { %v1636_v5 = vsel %vm1622_vm10, %v1618_v40, -inf  ;;  %2158 = vmatpush.msrb.mxu1 %v2089_v62 }
 0x1ca   : > { %v1681_v27 = vmax.f32 %v1617_v4, %v1636_v5 }
 0x1cb   : > { %v952_v30 = vpop.f32.mrf.mxu2  ;;  %v3309_v11 = vpop.f32.mrf.mxu3  ;;  %2159 = vmatpush.msrb.mxu1 %v2088_v10 }
 0x1cc   : > { %v1682_v32 = vrot.slane %v1681_v27, 4  ;;  %v825_v39 = vpop.f32.mrf.mxu0  ;;  %v890_v33 = vpop.f32.mrf.mxu1  ;;  %v1579_v48 = vrot.slane %v952_v30, 3  ;;  %v1680_v30 = vmax.f32 %v1678_v58, %v1679_v20 }
 0x1cd   : > { %v1491_v24 = vrot.slane %v825_v39, 1  ;;  %v1539_v57 = vrot.slane %v890_v33, 2 }
 0x1ce   : > { %v1683_v47 = vmax.f32 %v1681_v27, %v1682_v32 }
 0x1cf   : > { %v1499_v3 = vsel %vm1303_vm0, %v1483_v14, %v1491_v24  ;;  %v1507_v2 = vsel %vm1303_vm0, %v1491_v24, %v1483_v14  ;;  %1084 = vmatmul.f32.gmra.mxu0 %v2419_v0  ;;  %1149 = vmatmul.f32.gmra.mxu1 %v2419_v0  ;;  %v1547_v43 = vsel %vm1352_vm1, %v1531_v28, %v1539_v57  ;;  %v2119_v24 = vld [vmem:[#allocation8 + $0x178] sm:$0xff] }
 0x1d0   : > { %1214 = vmatmul.f32.gmra.mxu2 %v2419_v0  ;;  %v1684_v26 = vrot.slane %v1683_v47, 2  ;;  %v1522_v13 = vadd.f32 %v1499_v3, %v3085_v17  ;;  %v1523_v15 = vadd.f32 %v1507_v2, %v3096_v21  ;;  %1279 = vmatmul.f32.gmra.mxu3 %v2419_v0  ;;  %v1555_v42 = vsel %vm1352_vm1, %v1539_v57, %v1531_v28 }
 0x1d1   : > { %2164 = vmatpush.msrb.mxu2 %v2119_v24 }
 0x1d2   : > { %v1685_v50 = vmax.f32 %v1683_v47, %v1684_v26  ;;  %v1570_v16 = vadd.f32 %v1547_v43, %v1522_v13  ;;  %v1571_v1 = vadd.f32 %v1555_v42, %v1523_v15  ;;  %v1701_v26 = vadd.f32 %v3167_v63, %v1680_v30 }
 0x1d3   : > { %v955_v37 = vpop.f32.mrf.mxu2  ;;  %v3318_v55 = vpop.f32.mrf.mxu3 }
 0x1d4   : > { %v1587_v17 = vrot.slane %v955_v37, 3  ;;  %v1040_v8 = vpop.f32.mrf.mxu0  ;;  %v1105_v21 = vpop.f32.mrf.mxu1  ;;  %v1686_v25 = vrot.slane %v1685_v50, 1 }
 0x1d5   : > { %v1712_v47 = vrot.slane %v1040_v8, 1  ;;  %v1760_v2 = vrot.slane %v1105_v21, 2 }
 0x1d6   : > { %v1596_v4 = vsel %vm1588_vm9, %v1579_v48, %v1587_v17  ;;  %v1604_v40 = vsel %vm1588_vm9, %v1587_v17, %v1579_v48  ;;  %v1687_v52 = vmax.f32 %v1685_v50, %v1686_v25  ;;  %v1709_v50 = vmax.f32 %v1701_v26, 0.0 }
 0x1d7   : > { %v1619_v22 = vadd.f32 %v1596_v4, %v1570_v16  ;;  %v1620_v5 = vadd.f32 %v1604_v40, %v1571_v1  ;;  %2140 = vmatmul.f32.vlgmr.msrb.gmra.mxu0 %v3135_v60  ;;  %v1700_v60 = vadd.f32 %v3167_v63, %v1673_v29 }
 0x1d8   : > { %v1702_v58 = vadd.f32 %v3167_v63, %v1687_v52 }
 0x1d9   : > { %v1638_v27 = vsel %vm1622_vm10, %v1620_v5, -inf  ;;  %v1708_v37 = vmax.f32 %v1700_v60, 0.0 }
 0x1da   : > { %v1688_v19 = vmax.f32 %v1619_v22, %v1638_v27  ;;  %v1710_v4 = vmax.f32 %v1702_v58, 0.0 }
 0x1db   : > { %v1170_v32 = vpop.f32.mrf.mxu2  ;;  %v1235_v39 = vpop.f32.mrf.mxu3  ;;  %v2040_v5 = vrot.slane %v1708_v37, 4 }
 0x1dc   : > { %v1689_v33 = vrot.slane %v1688_v19, 4  ;;  %v1043_v14 = vpop.f32.mrf.mxu0  ;;  %v1108_v56 = vpop.f32.mrf.mxu1  ;;  %v1808_v21 = vrot.slane %v1170_v32, 3  ;;  %v1856_v16 = vrot.slane %v1235_v39, 4  ;;  %v2042_v32 = vrot.slane %v1709_v50, 3 }
 0x1dd   : > { %v1720_v54 = vrot.slane %v1043_v14, 1  ;;  %v1768_v0 = vrot.slane %v1108_v56, 2  ;;  %v2044_v14 = vrot.slane %v1710_v4, 2 }
 0x1de   : > { %v1690_v3 = vmax.f32 %v1688_v19, %v1689_v33 }
 0x1df   : > { %v1728_v57 = vsel %vm1303_vm0, %v1712_v47, %v1720_v54  ;;  %v1736_v46 = vsel %vm1303_vm0, %v1720_v54, %v1712_v47  ;;  %v1776_v28 = vsel %vm1352_vm1, %v1760_v2, %v1768_v0  ;;  %v1784_v62 = vsel %vm1352_vm1, %v1768_v0, %v1760_v2 }
 0x1e0   : > { %v1691_v13 = vrot.slane %v1690_v3, 2  ;;  %v1744_v15 = vadd.f32 %v1728_v57, %v3106_v59  ;;  %v1745_v36 = vadd.f32 %v1736_v46, %v3117_v23  ;;  %v2041_v54 = vsel %vm2014_vm6, %v2040_v5, %v3238_v41 }
 0x1e1   : > { %v2043_v2 = vsel %vm2017_vm7, %v2042_v32, %v2041_v54 }
 0x1e2   : > { %v1692_v48 = vmax.f32 %v1690_v3, %v1691_v13  ;;  %v1792_v43 = vadd.f32 %v1776_v28, %v1744_v15  ;;  %v1793_v42 = vadd.f32 %v1784_v62, %v1745_v36  ;;  %v2045_v26 = vsel %vm2020_vm8, %v2044_v14, %v2043_v2  ;;  %v2118_v28 = vld [vmem:[#allocation8 + $0x170] sm:$0xff]  ;;  %v2117_v62 = vld [vmem:[#allocation8 + $0x168] sm:$0xff]  ;;  %v2116_v2 = vld [vmem:[#allocation8 + $0x160] sm:$0xff] }
 0x1e3   : > { %v1173_v17 = vpop.f32.mrf.mxu2  ;;  %v1238_v10 = vpop.f32.mrf.mxu3  ;;  %2165 = vmatpush.msrb.mxu2 %v2118_v28 }
 0x1e4   : > { %v1693_v8 = vrot.slane %v1692_v48, 1  ;;  %v1816_v59 = vrot.slane %v1173_v17, 3  ;;  %v1046_v23 = vpop.f32.mrf.mxu0  ;;  %v1864_v1 = vrot.slane %v1238_v10, 4  ;;  %v1111_v61 = vpop.f32.mrf.mxu1 }
 0x1e5   : > { %v1713_v57 = vrot.slane %v1046_v23, 1  ;;  %v1761_v13 = vrot.slane %v1111_v61, 2  ;;  %2166 = vmatpush.msrb.mxu2 %v2117_v62 }
 0x1e6   : > { %v1824_v40 = vsel %vm1588_vm9, %v1808_v21, %v1816_v59  ;;  %v1832_v20 = vsel %vm1588_vm9, %v1816_v59, %v1808_v21  ;;  %v1694_v22 = vmax.f32 %v1692_v48, %v1693_v8  ;;  %v1873_v29 = vsel %vm1872_vm12, %v1856_v16, %v1864_v1 }
 0x1e7   : > { %v1840_v25 = vadd.f32 %v1824_v40, %v1792_v43  ;;  %v1841_v27 = vadd.f32 %v1832_v20, %v1793_v42  ;;  %v1881_v19 = vsel %vm1872_vm12, %v1864_v1, %v1856_v16  ;;  %2167 = vmatpush.msrb.mxu2 %v2116_v2 }
 0x1e8   : > { %v1703_v30 = vadd.f32 %v3167_v63, %v1694_v22 }
 0x1e9   : > { %v1889_v39 = vadd.f32 %v1873_v29, %v1840_v25  ;;  %v1890_v33 = vadd.f32 %v1881_v19, %v1841_v27 }
 0x1ea   : > { %v1711_v24 = vmax.f32 %v1703_v30, 0.0 }
 0x1eb   : > { %v1908_v52 = vsel %vm1906_vm13, %v1890_v33, -inf  ;;  %v1176_v47 = vpop.f32.mrf.mxu2  ;;  %v1241_v60 = vpop.f32.mrf.mxu3 }
 0x1ec   : > { %v1923_v56 = vmax.f32 %v1889_v39, %v1908_v52  ;;  %v1049_v3 = vpop.f32.mrf.mxu0  ;;  %v2046_v0 = vrot.slane %v1711_v24, 1  ;;  %v1114_v46 = vpop.f32.mrf.mxu1  ;;  %v1809_v10 = vrot.slane %v1176_v47, 3  ;;  %v1857_v1 = vrot.slane %v1241_v60, 4 }
 0x1ed   : > { %v1721_v63 = vrot.slane %v1049_v3, 1  ;;  %v1769_v15 = vrot.slane %v1114_v46, 2 }
 0x1ee   : > { %v2047_v36 = vsel %vm2023_vm11, %v2046_v0, %v2045_v26  ;;  %v1924_v17 = vrot.slane %v1923_v56, 4  ;;  %v2115_v0 = vld [vmem:[#allocation8 + $0x158] sm:$0xff] }
 0x1ef   : > { %v1729_v41 = vsel %vm1303_vm0, %v1713_v57, %v1721_v63  ;;  %v1737_v58 = vsel %vm1303_vm0, %v1721_v63, %v1713_v57  ;;  %2160 = vmatmul.f32.vlgmr.msrb.gmra.mxu1 %v2047_v36  ;;  %v1777_v43 = vsel %vm1352_vm1, %v1761_v13, %v1769_v15  ;;  %v1785_v42 = vsel %vm1352_vm1, %v1769_v15, %v1761_v13 }
 0x1f0   : > { %v1746_v37 = vadd.f32 %v1729_v41, %v3132_v53  ;;  %v1747_v48 = vadd.f32 %v1737_v58, %v3144_v12  ;;  %v1925_v4 = vmax.f32 %v1923_v56, %v1924_v17  ;;  %2168 = vmatpush.msrb.mxu2 %v2115_v0 }
 0x1f2   : > { %v1794_v8 = vadd.f32 %v1777_v43, %v1746_v37  ;;  %v1795_v21 = vadd.f32 %v1785_v42, %v1747_v48  ;;  %v1926_v19 = vrot.slane %v1925_v4, 2 }
 0x1f3   : > { %v1179_v59 = vpop.f32.mrf.mxu2  ;;  %v1244_v50 = vpop.f32.mrf.mxu3 }
 0x1f4   : > { %v1817_v23 = vrot.slane %v1179_v59, 3  ;;  %v1052_v16 = vpop.f32.mrf.mxu0  ;;  %v1865_v61 = vrot.slane %v1244_v50, 4  ;;  %v1117_v53 = vpop.f32.mrf.mxu1  ;;  %v1927_v54 = vmax.f32 %v1925_v4, %v1926_v19 }
 0x1f5   : > { %v1714_v24 = vrot.slane %v1052_v16, 1  ;;  %v1762_v60 = vrot.slane %v1117_v53, 2 }
 0x1f6   : > { %v1825_v12 = vsel %vm1588_vm9, %v1809_v10, %v1817_v23  ;;  %v1833_v40 = vsel %vm1588_vm9, %v1817_v23, %v1809_v10  ;;  %v1874_v5 = vsel %vm1872_vm12, %v1857_v1, %v1865_v61  ;;  %v1882_v25 = vsel %vm1872_vm12, %v1865_v61, %v1857_v1 }
 0x1f7   : > { %v1842_v20 = vadd.f32 %v1825_v12, %v1794_v8  ;;  %v1843_v22 = vadd.f32 %v1833_v40, %v1795_v21  ;;  %v1928_v28 = vrot.slane %v1927_v54, 1 }
 0x1f9   : > { %v1891_v27 = vadd.f32 %v1874_v5, %v1842_v20  ;;  %v1892_v29 = vadd.f32 %v1882_v25, %v1843_v22  ;;  %v1929_v23 = vmax.f32 %v1927_v54, %v1928_v28 }
 0x1fb   : > { %v1910_v30 = vsel %vm1906_vm13, %v1892_v29, -inf  ;;  %v1182_v32 = vpop.f32.mrf.mxu2  ;;  %v1247_v33 = vpop.f32.mrf.mxu3 }
 0x1fc   : > { %v1930_v39 = vmax.f32 %v1891_v27, %v1910_v30  ;;  %v1055_v14 = vpop.f32.mrf.mxu0  ;;  %v1120_v47 = vpop.f32.mrf.mxu1  ;;  %v1810_v43 = vrot.slane %v1182_v32, 3 }
 0x1fd   : > { %v1722_v52 = vrot.slane %v1055_v14, 1  ;;  %v1770_v3 = vrot.slane %v1120_v47, 2 }
 0x1fe   : > { %v1931_v56 = vrot.slane %v1930_v39, 4 }
 0x1ff   : > { %v1730_v57 = vsel %vm1303_vm0, %v1714_v24, %v1722_v52  ;;  %v1738_v63 = vsel %vm1303_vm0, %v1722_v52, %v1714_v24  ;;  %v1778_v15 = vsel %vm1352_vm1, %v1762_v60, %v1770_v3  ;;  %v1786_v36 = vsel %vm1352_vm1, %v1770_v3, %v1762_v60  ;;  %v2113_v60 = vld [vmem:[#allocation8 + $0x148] sm:$0xff] }
 0x200   : > { %v1932_v46 = vmax.f32 %v1930_v39, %v1931_v56  ;;  %v1748_v26 = vadd.f32 %v1730_v57, %v3157_v31  ;;  %v1749_v13 = vadd.f32 %v1738_v63, %v3169_v6  ;;  %v2420_v31 = vld [vmem:[#allocation7] sm:$0x7]  ;;  %v1858_v6 = vrot.slane %v1247_v33, 4  ;;  %v2114_v56 = vld [vmem:[#allocation8 + $0x150] sm:$0xff] }
 0x201   : > { %v3392_v21 = vperm.slane %v2420_v31, 2  ;;  %2169 = vmatpush.msrb.mxu2 %v2114_v56 }
 0x202   : > { %v1933_v62 = vrot.slane %v1932_v46, 2  ;;  %v1796_v41 = vadd.f32 %v1778_v15, %v1748_v26  ;;  %v1797_v58 = vadd.f32 %v1786_v36, %v1749_v13 }
 0x203   : > { %v1185_v37 = vpop.f32.mrf.mxu2  ;;  %v1250_v17 = vpop.f32.mrf.mxu3  ;;  %v1980_v25 = vadd.f32 %v3392_v21, %v1929_v23  ;;  %2170 = vmatpush.msrb.mxu2 %v2113_v60 }
 0x204   : > { %v1934_v48 = vmax.f32 %v1932_v46, %v1933_v62  ;;  %v1818_v42 = vrot.slane %v1185_v37, 3  ;;  %v1058_v8 = vpop.f32.mrf.mxu0  ;;  %v1866_v59 = vrot.slane %v1250_v17, 4  ;;  %v1123_v10 = vpop.f32.mrf.mxu1 }
 0x205   : > { %v1715_v33 = vrot.slane %v1058_v8, 1  ;;  %v1988_v3 = vmax.f32 %v1980_v25, 0.0  ;;  %v1763_v2 = vrot.slane %v1123_v10, 2 }
 0x206   : > { %v1935_v50 = vrot.slane %v1934_v48, 1  ;;  %v1826_v16 = vsel %vm1588_vm9, %v1810_v43, %v1818_v42  ;;  %v1834_v1 = vsel %vm1588_vm9, %v1818_v42, %v1810_v43  ;;  %v1875_v4 = vsel %vm1872_vm12, %v1858_v6, %v1866_v59 }
 0x207   : > { %v1844_v61 = vadd.f32 %v1826_v16, %v1796_v41  ;;  %v1845_v53 = vadd.f32 %v1834_v1, %v1797_v58  ;;  %v1883_v12 = vsel %vm1872_vm12, %v1866_v59, %v1858_v6 }
 0x208   : > { %v1936_v40 = vmax.f32 %v1934_v48, %v1935_v50 }
 0x209   : > { %v1893_v20 = vadd.f32 %v1875_v4, %v1844_v61  ;;  %v1894_v22 = vadd.f32 %v1883_v12, %v1845_v53 }
 0x20a   : > { %v1981_v5 = vadd.f32 %v3392_v21, %v1936_v40 }
 0x20b   : > { %v1912_v27 = vsel %vm1906_vm13, %v1894_v22, -inf  ;;  %v1188_v29 = vpop.f32.mrf.mxu2  ;;  %v1253_v32 = vpop.f32.mrf.mxu3 }
 0x20c   : > { %v1989_v19 = vmax.f32 %v1981_v5, 0.0  ;;  %v1937_v30 = vmax.f32 %v1893_v20, %v1912_v27  ;;  %v1061_v39 = vpop.f32.mrf.mxu0  ;;  %v1126_v24 = vpop.f32.mrf.mxu1  ;;  %v1811_v48 = vrot.slane %v1188_v29, 3  ;;  %v1859_v31 = vrot.slane %v1253_v32, 4  ;;  %v2112_v27 = vld [vmem:[#allocation8 + $0x140] sm:$0xff]  ;;  %v2111_v29 = vld [vmem:[#allocation8 + $0x138] sm:$0xff] }
 0x20d   : > { %v1723_v14 = vrot.slane %v1061_v39, 1  ;;  %v1771_v54 = vrot.slane %v1126_v24, 2  ;;  %2171 = vmatpush.msrb.mxu2 %v2112_v27  ;;  %v2108_v27 = vld [vmem:[#allocation8 + $0x120] sm:$0xff] }
 0x20e   : > { %v2057_v52 = vrot.slane %v1989_v19, 7  ;;  %v1938_v47 = vrot.slane %v1937_v30, 4 }
 0x20f   : > { %v1731_v0 = vsel %vm1303_vm0, %v1715_v33, %v1723_v14  ;;  %v1739_v57 = vsel %vm1303_vm0, %v1723_v14, %v1715_v33  ;;  %v1779_v13 = vsel %vm1352_vm1, %v1763_v2, %v1771_v54  ;;  %v1787_v15 = vsel %vm1352_vm1, %v1771_v54, %v1763_v2  ;;  %2172 = vmatpush.msrb.mxu2 %v2111_v29  ;;  %v2110_v2 = vld [vmem:[#allocation8 + $0x130] sm:$0xff]  ;;  %v2107_v29 = vld [vmem:[#allocation8 + $0x118] sm:$0xff] }
 0x210   : > { %v1939_v63 = vmax.f32 %v1937_v30, %v1938_v47  ;;  %v1750_v46 = vadd.f32 %v1731_v0, %v3184_v34  ;;  %v1751_v26 = vadd.f32 %v1739_v57, %v3198_v7  ;;  %v2058_v36 = vsel %vm2005_vm3, %v2057_v52, %v1988_v3  ;;  %v2109_v0 = vld [vmem:[#allocation8 + $0x128] sm:$0xff] }
 0x211   : > { %2173 = vmatpush.msrb.mxu2 %v2110_v2 }
 0x212   : > { %v1940_v28 = vrot.slane %v1939_v63, 2  ;;  %v1798_v62 = vadd.f32 %v1779_v13, %v1750_v46  ;;  %v1799_v41 = vadd.f32 %v1787_v15, %v1751_v26 }
 0x213   : > { %v1191_v58 = vpop.f32.mrf.mxu2  ;;  %v1256_v42 = vpop.f32.mrf.mxu3  ;;  %2174 = vmatpush.msrb.mxu2 %v2109_v0 }
 0x214   : > { %v1941_v37 = vmax.f32 %v1939_v63, %v1940_v28  ;;  %v1819_v43 = vrot.slane %v1191_v58, 3  ;;  %v1064_v34 = vpop.f32.mrf.mxu0  ;;  %v1867_v17 = vrot.slane %v1256_v42, 4  ;;  %v3417_v7 = vpop.f32.mrf.mxu1 }
 0x215   : > { %2175 = vmatpush.msrb.mxu2 %v2108_v27 }
 0x216   : > { %v1942_v8 = vrot.slane %v1941_v37, 1  ;;  %v1827_v6 = vsel %vm1588_vm9, %v1811_v48, %v1819_v43  ;;  %v1835_v59 = vsel %vm1588_vm9, %v1819_v43, %v1811_v48  ;;  %v1876_v16 = vsel %vm1872_vm12, %v1859_v31, %v1867_v17 }
 0x217   : > { %v1846_v10 = vadd.f32 %v1827_v6, %v1798_v62  ;;  %v1847_v23 = vadd.f32 %v1835_v59, %v1799_v41  ;;  %v1884_v1 = vsel %vm1872_vm12, %v1867_v17, %v1859_v31  ;;  %v1716_v41 = vrot.slane %v1064_v34, 1  ;;  %2176 = vmatpush.msrb.mxu2 %v2107_v29 }
 0x218   : > { %v1943_v50 = vmax.f32 %v1941_v37, %v1942_v8 }
 0x219   : > { %v1895_v61 = vadd.f32 %v1876_v16, %v1846_v10  ;;  %v1896_v53 = vadd.f32 %v1884_v1, %v1847_v23 }
 0x21a   : > { %v1982_v4 = vadd.f32 %v3392_v21, %v1943_v50  ;;  %v1764_v50 = vrot.slane %v3417_v7, 2 }
 0x21b   : > { %v1914_v12 = vsel %vm1906_vm13, %v1896_v53, -inf  ;;  %v3430_v40 = vpop.f32.mrf.mxu2  ;;  %v3432_v5 = vpop.f32.mrf.mxu3 }
 0x21c   : > { %v1990_v20 = vmax.f32 %v1982_v4, 0.0  ;;  %v1944_v22 = vmax.f32 %v1895_v61, %v1914_v12  ;;  %v1067_v25 = vpop.f32.mrf.mxu0  ;;  %v3434_v19 = vpop.f32.mrf.mxu1  ;;  %v1812_v16 = vrot.slane %v3430_v40, 3 }
 0x21d   : > { %v1724_v15 = vrot.slane %v1067_v25, 1  ;;  %v1772_v42 = vrot.slane %v3434_v19, 2  ;;  %v1860_v19 = vrot.slane %v3432_v5, 4 }
 0x21e   : > { %v2059_v30 = vrot.slane %v1990_v20, 6  ;;  %v1945_v32 = vrot.slane %v1944_v22, 4 }
 0x21f   : > { %v1740_v37 = vsel %vm1303_vm0, %v1724_v15, %v1716_v41  ;;  %v1732_v31 = vsel %vm1303_vm0, %v1716_v41, %v1724_v15 }
 0x220   : > { %v1946_v39 = vmax.f32 %v1944_v22, %v1945_v32  ;;  %v2060_v33 = vsel %vm2008_vm4, %v2059_v30, %v2058_v36  ;;  %v1753_v6 = vadd.f32 %v1740_v37, %v3224_v45  ;;  %v1752_v20 = vadd.f32 %v1732_v31, %v3214_v9 }
 0x221   : > { %v1788_v45 = vsel %vm1352_vm1, %v1772_v42, %v1764_v50  ;;  %v1780_v32 = vsel %vm1352_vm1, %v1764_v50, %v1772_v42 }
 0x222   : > { %v1947_v14 = vrot.slane %v1946_v39, 2  ;;  %v1801_v25 = vadd.f32 %v1788_v45, %v1753_v6 }
 0x223   : > { %v1197_v24 = vpop.f32.mrf.mxu2  ;;  %v3437_v47 = vpop.f32.mrf.mxu3 }
 0x224   : > { %v1948_v52 = vmax.f32 %v1946_v39, %v1947_v14  ;;  %v1070_v54 = vpop.f32.mrf.mxu0  ;;  %v1135_v56 = vpop.f32.mrf.mxu1  ;;  %v1820_v17 = vrot.slane %v1197_v24, 3  ;;  %v1868_v9 = vrot.slane %v3437_v47, 4  ;;  %v1800_v14 = vadd.f32 %v1780_v32, %v1752_v20 }
 0x225   : > { %v1717_v58 = vrot.slane %v1070_v54, 1  ;;  %v1765_v4 = vrot.slane %v1135_v56, 2 }
 0x226   : > { %v1949_v60 = vrot.slane %v1948_v52, 1  ;;  %v1836_v22 = vsel %vm1588_vm9, %v1820_v17, %v1812_v16  ;;  %v1885_v0 = vsel %vm1872_vm12, %v1868_v9, %v1860_v19  ;;  %v1877_v41 = vsel %vm1872_vm12, %v1860_v19, %v1868_v9  ;;  %v2104_v9 = vld [vmem:[#allocation8 + $0x100] sm:$0xff] }
 0x227   : > { %v1849_v39 = vadd.f32 %v1836_v22, %v1801_v25 }
 0x228   : > { %v1950_v3 = vmax.f32 %v1948_v52, %v1949_v60 }
 0x22a   : > { %v1983_v57 = vadd.f32 %v3392_v21, %v1950_v3 }
 0x22b   : > { %v1200_v63 = vpop.f32.mrf.mxu2  ;;  %v3440_v26 = vpop.f32.mrf.mxu3 }
 0x22c   : > { %v1991_v46 = vmax.f32 %v1983_v57, 0.0  ;;  %v1073_v13 = vpop.f32.mrf.mxu0  ;;  %v1138_v36 = vpop.f32.mrf.mxu1  ;;  %v1813_v12 = vrot.slane %v1200_v63, 3  ;;  %v1861_v47 = vrot.slane %v3440_v26, 4 }
 0x22d   : > { %v1725_v62 = vrot.slane %v1073_v13, 1  ;;  %v1773_v34 = vrot.slane %v1138_v36, 2  ;;  %v1898_v13 = vadd.f32 %v1885_v0, %v1849_v39 }
 0x22e   : > { %v2061_v28 = vrot.slane %v1991_v46, 5 }
 0x22f   : > { %v1741_v43 = vsel %vm1303_vm0, %v1725_v62, %v1717_v58  ;;  %v1733_v1 = vsel %vm1303_vm0, %v1717_v58, %v1725_v62  ;;  %v1789_v40 = vsel %vm1352_vm1, %v1773_v34, %v1765_v4  ;;  %v1781_v24 = vsel %vm1352_vm1, %v1765_v4, %v1773_v34 }
 0x230   : > { %v3445_v48 = vsel %vm2011_vm5, %v2061_v28, %v2060_v33  ;;  %v1755_v61 = vadd.f32 %v1741_v43, %v3247_v38  ;;  %v1754_v7 = vadd.f32 %v1733_v1, %v3232_v44  ;;  %v1828_v44 = vsel %vm1588_vm9, %v1812_v16, %v1820_v17 }
 0x231   : > { %v1848_v2 = vadd.f32 %v1828_v44, %v1800_v14 }
 0x232   : > { %v1803_v30 = vadd.f32 %v1789_v40, %v1755_v61  ;;  %v1802_v56 = vadd.f32 %v1781_v24, %v1754_v7  ;;  %v2106_v7 = vld [vmem:[#allocation8 + $0x110] sm:$0xff]  ;;  %v2105_v40 = vld [vmem:[#allocation8 + $0x108] sm:$0xff] }
 0x233   : > { %v1203_v8 = vpop.f32.mrf.mxu2  ;;  %v1268_v10 = vpop.f32.mrf.mxu3  ;;  %v1897_v37 = vadd.f32 %v1877_v41, %v1848_v2  ;;  %2177 = vmatpush.msrb.mxu2 %v2106_v7 }
 0x234   : > { %v1821_v59 = vrot.slane %v1203_v8, 3  ;;  %v1076_v23 = vpop.f32.mrf.mxu0  ;;  %v1141_v53 = vpop.f32.mrf.mxu1  ;;  %v1869_v33 = vrot.slane %v1268_v10, 4  ;;  %v1916_v8 = vsel %vm1906_vm13, %v1898_v13, -inf }
 0x235   : > { %v1718_v57 = vrot.slane %v1076_v23, 1  ;;  %v1766_v6 = vrot.slane %v1141_v53, 2  ;;  %2178 = vmatpush.msrb.mxu2 %v2105_v40 }
 0x236   : > { %v1837_v38 = vsel %vm1588_vm9, %v1821_v59, %v1813_v12  ;;  %v1829_v52 = vsel %vm1588_vm9, %v1813_v12, %v1821_v59  ;;  %v1886_v36 = vsel %vm1872_vm12, %v1869_v33, %v1861_v47  ;;  %v1878_v43 = vsel %vm1872_vm12, %v1861_v47, %v1869_v33 }
 0x237   : > { %v1851_v5 = vadd.f32 %v1837_v38, %v1803_v30  ;;  %v1850_v15 = vadd.f32 %v1829_v52, %v1802_v56  ;;  %2179 = vmatpush.msrb.mxu2 %v2104_v9 }
 0x239   : > { %v1900_v28 = vadd.f32 %v1886_v36, %v1851_v5  ;;  %v1899_v31 = vadd.f32 %v1878_v43, %v1850_v15 }
 0x23b   : > { %v1206_v54 = vpop.f32.mrf.mxu2  ;;  %v1271_v60 = vpop.f32.mrf.mxu3  ;;  %v1918_v34 = vsel %vm1906_vm13, %v1900_v28, -inf }
 0x23c   : > { %v1079_v3 = vpop.f32.mrf.mxu0  ;;  %v1144_v46 = vpop.f32.mrf.mxu1  ;;  %v1814_v10 = vrot.slane %v1206_v54, 3  ;;  %v1958_v53 = vmax.f32 %v1899_v31, %v1918_v34  ;;  %v1862_v45 = vrot.slane %v1271_v60, 4 }
 0x23d   : > { %v1726_v63 = vrot.slane %v1079_v3, 1  ;;  %v1774_v58 = vrot.slane %v1144_v46, 2 }
 0x23e   : > { %v1959_v39 = vrot.slane %v1958_v53, 4 }
 0x23f   : > { %v1734_v62 = vsel %vm1303_vm0, %v1718_v57, %v1726_v63  ;;  %v1742_v26 = vsel %vm1303_vm0, %v1726_v63, %v1718_v57  ;;  %v1782_v23 = vsel %vm1352_vm1, %v1766_v6, %v1774_v58  ;;  %v1790_v50 = vsel %vm1352_vm1, %v1774_v58, %v1766_v6 }
 0x240   : > { %v1756_v42 = vadd.f32 %v1734_v62, %v3278_v51  ;;  %v1757_v17 = vadd.f32 %v1742_v26, %v3296_v18  ;;  %v1951_v18 = vmax.f32 %v1897_v37, %v1916_v8  ;;  %v1960_v3 = vmax.f32 %v1958_v53, %v1959_v39 }
 0x242   : > { %v1804_v61 = vadd.f32 %v1782_v23, %v1756_v42  ;;  %v1805_v4 = vadd.f32 %v1790_v50, %v1757_v17  ;;  %v1952_v30 = vrot.slane %v1951_v18, 4  ;;  %v1961_v28 = vrot.slane %v1960_v3, 2 }
 0x243   : > { %v1209_v59 = vpop.f32.mrf.mxu2  ;;  %v1274_v51 = vpop.f32.mrf.mxu3 }
 0x244   : > { %v1822_v16 = vrot.slane %v1209_v59, 3  ;;  %v1082_v1 = vpop.f32.mrf.mxu0  ;;  %v1870_v12 = vrot.slane %v1274_v51, 4  ;;  %v1147_v20 = vpop.f32.mrf.mxu1  ;;  %v1953_v54 = vmax.f32 %v1951_v18, %v1952_v30 }
 0x245   : > { %v1719_v47 = vrot.slane %v1082_v1, 1  ;;  %v1767_v62 = vrot.slane %v1147_v20, 2 }
 0x246   : > { %v1830_v22 = vsel %vm1588_vm9, %v1814_v10, %v1822_v16  ;;  %v1838_v25 = vsel %vm1588_vm9, %v1822_v16, %v1814_v10  ;;  %v1879_v29 = vsel %vm1872_vm12, %v1862_v45, %v1870_v12  ;;  %v1887_v19 = vsel %vm1872_vm12, %v1870_v12, %v1862_v45 }
 0x247   : > { %v1852_v38 = vadd.f32 %v1830_v22, %v1804_v61  ;;  %v1853_v27 = vadd.f32 %v1838_v25, %v1805_v4  ;;  %v1954_v13 = vrot.slane %v1953_v54, 2 }
 0x249   : > { %v1901_v32 = vadd.f32 %v1879_v29, %v1852_v38  ;;  %v1902_v44 = vadd.f32 %v1887_v19, %v1853_v27  ;;  %v1955_v8 = vmax.f32 %v1953_v54, %v1954_v13 }
 0x24b   : > { %v1920_v33 = vsel %vm1906_vm13, %v1902_v44, -inf  ;;  %v1212_v14 = vpop.f32.mrf.mxu2  ;;  %v1277_v52 = vpop.f32.mrf.mxu3  ;;  %v1956_v18 = vrot.slane %v1955_v8, 1 }
 0x24c   : > { %v1965_v24 = vmax.f32 %v1901_v32, %v1920_v33  ;;  %v1085_v5 = vpop.f32.mrf.mxu0  ;;  %v1150_v60 = vpop.f32.mrf.mxu1  ;;  %v1815_v58 = vrot.slane %v1212_v14, 3  ;;  %v1863_v59 = vrot.slane %v1277_v52, 4 }
 0x24d   : > { %v1727_v56 = vrot.slane %v1085_v5, 1  ;;  %v1775_v46 = vrot.slane %v1150_v60, 2  ;;  %v1957_v22 = vmax.f32 %v1955_v8, %v1956_v18 }
 0x24e   : > { %v1966_v2 = vrot.slane %v1965_v24, 4 }
 0x24f   : > { %v1735_v0 = vsel %vm1303_vm0, %v1719_v47, %v1727_v56  ;;  %v1743_v57 = vsel %vm1303_vm0, %v1727_v56, %v1719_v47  ;;  %v1783_v37 = vsel %vm1352_vm1, %v1767_v62, %v1775_v46  ;;  %v1791_v43 = vsel %vm1352_vm1, %v1775_v46, %v1767_v62 }
 0x250   : > { %v1967_v63 = vmax.f32 %v1965_v24, %v1966_v2  ;;  %v1758_v15 = vadd.f32 %v1735_v0, %v3309_v11  ;;  %v1759_v36 = vadd.f32 %v1743_v57, %v3318_v55  ;;  %v1962_v11 = vmax.f32 %v1960_v3, %v1961_v28 }
 0x251   : > { %v1984_v27 = vadd.f32 %v3392_v21, %v1957_v22 }
 0x252   : > { %v1968_v26 = vrot.slane %v1967_v63, 2  ;;  %v1806_v31 = vadd.f32 %v1783_v37, %v1758_v15  ;;  %v1807_v6 = vadd.f32 %v1791_v43, %v1759_v36  ;;  %v1963_v12 = vrot.slane %v1962_v11, 1 }
 0x253   : > { %v1215_v41 = vpop.f32.mrf.mxu2  ;;  %v1280_v17 = vpop.f32.mrf.mxu3  ;;  %v1992_v30 = vmax.f32 %v1984_v27, 0.0 }
 0x254   : > { %v1823_v42 = vrot.slane %v1215_v41, 3  ;;  %v1871_v34 = vrot.slane %v1280_v17, 4  ;;  %v1969_v23 = vmax.f32 %v1967_v63, %v1968_v26  ;;  %v1964_v25 = vmax.f32 %v1962_v11, %v1963_v12  ;;  %v2141_v2 = vpop.f32.mrf.mxu0 }
 0x255   : > { %v2063_v33 = vrot.slane %v1992_v30, 4 }
 0x256   : > { %v1831_v55 = vsel %vm1588_vm9, %v1815_v58, %v1823_v42  ;;  %v1839_v10 = vsel %vm1588_vm9, %v1823_v42, %v1815_v58  ;;  %v1880_v51 = vsel %vm1872_vm12, %v1863_v59, %v1871_v34  ;;  %v1888_v1 = vsel %vm1872_vm12, %v1871_v34, %v1863_v59 }
 0x257   : > { %v1854_v50 = vadd.f32 %v1831_v55, %v1806_v31  ;;  %v1855_v16 = vadd.f32 %v1839_v10, %v1807_v6  ;;  %v1970_v20 = vrot.slane %v1969_v23, 1  ;;  %v1985_v35 = vadd.f32 %v3392_v21, %v1964_v25 }
 0x258   : > { %v2064_v54 = vsel %vm2014_vm6, %v2063_v33, %v3445_v48 }
 0x259   : > { %v1903_v61 = vadd.f32 %v1880_v51, %v1854_v50  ;;  %v1904_v4 = vadd.f32 %v1888_v1, %v1855_v16  ;;  %v1971_v40 = vmax.f32 %v1969_v23, %v1970_v20  ;;  %v1993_v49 = vmax.f32 %v1985_v35, 0.0 }
 0x25b   : > { %v1922_v53 = vsel %vm1906_vm13, %v1904_v4, -inf  ;;  %v1986_v19 = vadd.f32 %v3392_v21, %v1971_v40  ;;  %v2065_v24 = vrot.slane %v1993_v49, 3 }
 0x25c   : > { %v1972_v45 = vmax.f32 %v1903_v61, %v1922_v53 }
 0x25d   : > { %v1994_v44 = vmax.f32 %v1986_v19, 0.0  ;;  %v2066_v47 = vsel %vm2017_vm7, %v2065_v24, %v2064_v54 }
 0x25e   : > { %v1973_v7 = vrot.slane %v1972_v45, 4 }
 0x25f   : > { %v2067_v52 = vrot.slane %v1994_v44, 2 }
 0x260   : > { %v1974_v38 = vmax.f32 %v1972_v45, %v1973_v7 }
 0x261   : > { %v2068_v60 = vsel %vm2020_vm8, %v2067_v52, %v2066_v47 }
 0x262   : > { %v1975_v29 = vrot.slane %v1974_v38, 2 }
 0x264   : > { %v1976_v9 = vmax.f32 %v1974_v38, %v1975_v29 }
 0x266   : > { %v1977_v32 = vrot.slane %v1976_v9, 1 }
 0x268   : > { %v1978_v39 = vmax.f32 %v1976_v9, %v1977_v32 }
 0x26a   : > { %v1987_v14 = vadd.f32 %v3392_v21, %v1978_v39  ;;  %v2403_v21 = vld [vmem:[%s3580_s4] ss:$0 sm:$0xff] }
 0x26b   : > { %v2142_v0 = vadd.f32 %v2403_v21, %v2141_v2 }
 0x26c   : > { %v1995_v5 = vmax.f32 %v1987_v14, 0.0  ;;  %v2161_v48 = vpop.f32.mrf.mxu1 }
 0x26d   : > { %v2162_v57 = vadd.f32 %v2161_v48, %v2142_v0 }
 0x26e   : > { %v2069_v56 = vrot.slane %v1995_v5, 1 }
 0x270   : > { %v2070_v3 = vsel %vm2023_vm11, %v2069_v56, %v2068_v60 }
 0x271   : > { %2180 = vmatmul.f32.vlgmr.msrb.gmra.mxu2 %v2070_v3 }
 0x2f4   : > { %v2181_v63 = vpop.f32.mrf.mxu2 }
 0x2f5   : > { %v2182_v46 = vadd.f32 %v2181_v63, %v2162_v57 }
 0x2f7   : > { %2184 = vst [vmem:[%s293_s13] sm:$0xff] %v2182_v46 }
 0x2f8   : > { %2568 = shalt.err (!%p2565_p10)
}
 0x2f9   : > { %2336 = dma.vmem_to_hbm [thread:$0]  (%p2738_p0), %s2199_s12, 128, %s2201_s14, %s2186_s22  }
 0x2fa PF: > { %p2363_p11 = scmp.ge.s32.totalorder %s2615_s21, 2  ;;  %s2212_s17 = sand.u32 1, %s2603_s18  }
 0x2fb   : > { %s2213_s28 = scalar_lea.sflag [#allocation4], %s2212_s17 }
 0x2fc   : > { %p2353_p12 = pnand %p2363_p11, %p2689_p6 }
 0x2fe   : > { %p2354_p13 = pneg %p2353_p12 }
 0x300   : > { %2598 = dma.done.wait (%p2354_p13), %s2213_s28, 128  }
 0x301   : > { %2600 = vsyncadd (%p2354_p13), %s2213_s28, 4294967168  ;;  %p20_p3 = scmp.ge.s32.totalorder %s2725_s30, 6   ;;  %s3590_s18 = smov %s2607_s19 }
 0x302   : > { %s3591_s19 = smov %s2611_s20  ;;  %s3592_s20 = smov %s2734_s9 }
 0x303   : > { %s3593_s21 = smov %s2725_s30  ;;  %22 = sbr.rel (!%p20_p3) target bundleno = 7 (0x7), region = 97 }
 0x308   :  { %2219 = vsyncpa [#allocation3], 1 }
 0x309   :  { %2221 = vsyncpa [#allocation3 + $0x1], 1 }
 0x30a   :  { %2222 = vsyncpa [#allocation6], 1 }
 0x30b   :  { %2223 = vsyncpa [#allocation9], 1 }
 0x30c   :  { %2224 = vsyncpa [#allocation4], 1 }
 0x30d   :  { %2226 = vsyncpa [#allocation4 + $0x1], 1 }

</bundles_post_ra>
